<compile_context>
chip_gen: v7x
topology: tpu7x:2x2x1
jax: 0.10.0
libtpu: 0.0.40
codegen_flags: <defaults>
</compile_context>

<pallas_src>
import jax
import jax.numpy as jnp
from jax import lax
from jax.experimental import pallas as pl
from jax.experimental.pallas import tpu as pltpu


# ----------------------------------------------------------------------------
# Fused forward kernel: conv1 -> conv2 -> conv3+proj -> LSTM -> head -> sigmoid
# All matmuls: bf16 inputs, f32 MXU accumulation.  LSTM state stays f32.
# ----------------------------------------------------------------------------
def _fused_forward_kernel(lhs1_ref, w1_ref, b1_ref, w2_ref, b2_ref,
                          w3_ref, b3_ref, wih_ref, bsum_ref,
                          whh_ref, hw_ref, hb_ref,
                          o_ref, y1pad_ref, y2pad_ref):
    f32, bf16 = jnp.float32, jnp.bfloat16
    M = lhs1_ref.shape[0]                  # W1 * B rows, time-major (w, b)
    B = o_ref.shape[0]
    W1 = M // B
    PAD = 2 * B                            # width pad of 2 folded into rows
    H = whh_ref.shape[0]
    H4 = whh_ref.shape[1]                  # 4 * hidden (gate order i|f|g|o)
    T_seq = (W1 - 1) // 2 + 1              # stride-2 conv3 output length
    C2 = w2_ref.shape[2]                   # 64
    C3 = w3_ref.shape[2]                   # 128

    # conv1 (1x7, stride 2) as ONE matmul with block-diagonal-expanded weights;
    # output rows are (w, b), lanes are (h, c1): exactly what conv2's im2col
    # needs, so no relayout / transpose between stages.
    y1 = jnp.dot(lhs1_ref[...].astype(bf16), w1_ref[...],
                 preferred_element_type=f32)
    y1 = jnp.maximum(y1 + b1_ref[...], 0.0)

    # Zero-padded activation slab (width pad == 2*B leading/trailing rows).
    y1pad_ref[...] = jnp.zeros_like(y1pad_ref)
    y1pad_ref[pl.ds(PAD, M), :] = y1

    # conv2 (n_ch x 5, pad 2): sum of 5 row-shifted slab matmuls, K = n_ch*32.
    acc2 = jnp.zeros((M, C2), f32)
    for k in range(5):
        slab = y1pad_ref[pl.ds(k * B, M), :].astype(bf16)
        acc2 = acc2 + jnp.dot(slab, w2_ref[k], preferred_element_type=f32)
    y2 = jnp.maximum(acc2 + b2_ref[...], 0.0)

    y2pad_ref[...] = jnp.zeros_like(y2pad_ref)
    y2pad_ref[pl.ds(PAD, M), :] = y2

    # conv3 (1x5, logical stride 2) computed densely at every width position
    # (the LSTM reads the even rows), fused with the LSTM input projection so
    # the non-recurrent half of the LSTM matmuls runs as one dense MXU matmul.
    acc3 = jnp.zeros((M, C3), f32)
    for k in range(5):
        slab = y2pad_ref[pl.ds(k * B, M), :].astype(bf16)
        acc3 = acc3 + jnp.dot(slab, w3_ref[k], preferred_element_type=f32)
    s_all = jnp.maximum(acc3 + b3_ref[...], 0.0)
    gx_all = jnp.dot(s_all.astype(bf16), wih_ref[...],
                     preferred_element_type=f32) + bsum_ref[...]

    # LSTM recurrence: f32 state, one lane-dense (B,H)@(H,4H) matmul per step,
    # sigmoid/tanh applied to the full (B,4H) vreg (EUP slot) before gate
    # extraction; time loop fully unrolled (T_seq is small and static).
    whh = whh_ref[...]                     # (H, 4H), loop-invariant load
    h = jnp.zeros((B, H), f32)
    c = jnp.zeros((B, H), f32)
    for t in range(T_seq):
        row0 = 2 * t * B                   # even width position 2t, all batches
        g = gx_all[row0:row0 + B, :] + jnp.dot(h, whh,
                                               preferred_element_type=f32)
        sg = jax.nn.sigmoid(g)             # full-vreg EUP
        tg = jnp.tanh(g)                   # full-vreg EUP
        i_g = sg[:, 0 * H:1 * H]
        f_g = sg[:, 1 * H:2 * H]
        g_g = tg[:, 2 * H:3 * H]
        o_g = sg[:, 3 * H:4 * H]
        c = f_g * c + i_g * g_g
        h = o_g * jnp.tanh(c)

    # Head (Dropout is identity at inference) + sigmoid.
    logits = jnp.dot(h, hw_ref[...], preferred_element_type=f32) + hb_ref[...]
    o_ref[...] = jax.nn.sigmoid(logits)


# ----------------------------------------------------------------------------
# One-time repack of PyTorch-layout weights into kernel-ready layouts.
# ----------------------------------------------------------------------------
def precompute_params(p, n_ch, hidden):
    H = hidden
    f32, bf16 = jnp.float32, jnp.bfloat16
    w1m = p['conv1_w'].reshape(32, 7)                         # (c1, k)
    eye = jnp.eye(n_ch, dtype=f32)
    # Block-diagonal expansion: rows (h_in, k), cols (h_out, c1).
    w1bd = jnp.einsum('ck,hj->hkjc', w1m, eye).reshape(n_ch * 7, n_ch * 32)
    b1t = jnp.tile(p['conv1_b'], n_ch).reshape(1, n_ch * 32)
    # conv2 weights per width tap k: rows (h, c1), cols c2.
    w2all = jnp.transpose(p['conv2_w'], (3, 2, 1, 0)).reshape(5, n_ch * 32, 64)
    b2 = p['conv2_b'].reshape(1, 64)
    # conv3 weights per width tap k: rows c2, cols c3.
    w3all = jnp.transpose(p['conv3_w'][:, :, 0, :], (2, 1, 0))  # (5, 64, 128)
    b3 = p['conv3_b'].reshape(1, 128)
    wih = p['lstm_w_ih'].T                                    # (128, 4H) i|f|g|o
    bsum = (p['lstm_b_ih'] + p['lstm_b_hh']).reshape(1, 4 * H)
    whh = p['lstm_w_hh'].T                                    # (H, 4H)
    hw = p['head_w'].T                                        # (H, 1)
    hb = p['head_b'].reshape(1, 1)
    return {
        'w1bd': w1bd.astype(bf16), 'b1t': b1t.astype(f32),
        'w2all': w2all.astype(bf16), 'b2': b2.astype(f32),
        'w3all': w3all.astype(bf16), 'b3': b3.astype(f32),
        'wih': wih.astype(bf16), 'bsum': bsum.astype(f32),
        'whh': whh.astype(f32), 'hw': hw.astype(f32), 'hb': hb.astype(f32),
    }


# ----------------------------------------------------------------------------
# Forward wrapper: conv1 im2col on the raw input (only XLA glue left), then
# one fused pallas_call.
# ----------------------------------------------------------------------------
def cnn2d_lstm_forward(x, kp):
    """x: (B, n_ch, T) f32; kp: precompute_params output.  Returns (B,) f32."""
    B, n_ch, T = x.shape
    W1 = (T + 2 * 3 - 7) // 2 + 1
    H = kp['whh'].shape[0]
    H4 = 4 * H

    # conv1 im2col, rows time-major (w, b), cols (h, k).  Tiny (~7 KB) glue.
    xpad = jnp.pad(x, ((0, 0), (0, 0), (3, 3)))
    taps = [lax.slice_in_dim(xpad, k, k + 2 * (W1 - 1) + 1, stride=2, axis=2)
            for k in range(7)]                                # each (B, n_ch, W1)
    cols = jnp.stack(taps, axis=-1)                           # (B, n_ch, W1, 7)
    lhs1 = cols.transpose(2, 0, 1, 3).reshape(W1 * B, n_ch * 7)

    args = (lhs1, kp['w1bd'], kp['b1t'], kp['w2all'], kp['b2'],
            kp['w3all'], kp['b3'], kp['wih'], kp['bsum'],
            kp['whh'], kp['hw'], kp['hb'])
    vspec = pl.BlockSpec(memory_space=pltpu.MemorySpace.VMEM)

    M = W1 * B
    T_seq = (W1 - 1) // 2 + 1
    flops = 2 * M * (n_ch * 7 * n_ch * 32 + 5 * n_ch * 32 * 64
                     + 5 * 64 * 128 + 128 * H4)
    flops += T_seq * (2 * B * H * H4 + 10 * B * H) + 2 * B * H
    trans = T_seq * B * (2 * H4 + H) + B
    bytes_accessed = sum(int(a.size) * a.dtype.itemsize for a in args) + 4 * B

    out = pl.pallas_call(
        _fused_forward_kernel,
        out_shape=jax.ShapeDtypeStruct((B, 1), jnp.float32),
        in_specs=[vspec] * len(args),
        out_specs=vspec,
        scratch_shapes=[
            pltpu.VMEM(((W1 + 4) * B, n_ch * 32), jnp.float32),  # padded y1 slab
            pltpu.VMEM(((W1 + 4) * B, 64), jnp.float32),         # padded y2 slab
        ],
        cost_estimate=pl.CostEstimate(flops=flops, transcendentals=trans,
                                      bytes_accessed=bytes_accessed),
        # No grid: total working set (<1 MB) is VMEM-resident even on v7x;
        # megacore / pipelining are non-levers at this size (see perf review).
    )(*args)
    return out[:, 0]


# ----------------------------------------------------------------------------
# Pure-JAX f32 reference (validation only).
# ----------------------------------------------------------------------------
def ref_forward(x, p):
    xb = x[:, None, :, :]

    def conv(inp, w, b, stride, pad):
        y = lax.conv_general_dilated(inp, w, window_strides=stride, padding=pad,
                                     dimension_numbers=('NCHW', 'OIHW', 'NCHW'))
        return y + b[None, :, None, None]

    y = jax.nn.relu(conv(xb, p['conv1_w'], p['conv1_b'], (1, 2), [(0, 0), (3, 3)]))
    y = jax.nn.relu(conv(y, p['conv2_w'], p['conv2_b'], (1, 1), [(0, 0), (2, 2)]))
    y = jax.nn.relu(conv(y, p['conv3_w'], p['conv3_b'], (1, 2), [(0, 0), (2, 2)]))
    seq = jnp.transpose(y[:, :, 0, :], (0, 2, 1))             # (B, T_seq, 128)

    B = seq.shape[0]
    H = p['lstm_w_hh'].shape[1]
    Wih, Whh = p['lstm_w_ih'], p['lstm_w_hh']
    bsum = p['lstm_b_ih'] + p['lstm_b_hh']

    def step(carry, x_t):
        h, c = carry
        g = x_t @ Wih.T + h @ Whh.T + bsum
        i = jax.nn.sigmoid(g[:, :H])
        f = jax.nn.sigmoid(g[:, H:2 * H])
        gg = jnp.tanh(g[:, 2 * H:3 * H])
        o = jax.nn.sigmoid(g[:, 3 * H:])
        c = f * c + i * gg
        h = o * jnp.tanh(c)
        return (h, c), None

    (h, _), _ = lax.scan(step, (jnp.zeros((B, H), jnp.float32),
                                jnp.zeros((B, H), jnp.float32)),
                         jnp.transpose(seq, (1, 0, 2)))
    logits = h @ p['head_w'].T + p['head_b']
    return jax.nn.sigmoid(logits)[:, 0]


# ----------------------------------------------------------------------------
# Deterministic parameter init + run.
# ----------------------------------------------------------------------------
def init_params(key, n_ch, hidden):
    ks = jax.random.split(key, 12)
    f32 = jnp.float32

    def w(k, shape, scale=0.1):
        return (scale * jax.random.normal(k, shape)).astype(f32)

    return {
        'conv1_w': w(ks[0], (32, 1, 1, 7)),
        'conv1_b': w(ks[1], (32,)),
        'conv2_w': w(ks[2], (64, 32, n_ch, 5), 0.02),
        'conv2_b': w(ks[3], (64,)),
        'conv3_w': w(ks[4], (128, 64, 1, 5), 0.05),
        'conv3_b': w(ks[5], (128,)),
        'lstm_w_ih': w(ks[6], (4 * hidden, 128)),
        'lstm_w_hh': w(ks[7], (4 * hidden, hidden)),
        'lstm_b_ih': w(ks[8], (4 * hidden,)),
        'lstm_b_hh': w(ks[9], (4 * hidden,)),
        'head_w': w(ks[10], (1, hidden)),
        'head_b': w(ks[11], (1,)),
    }


if __name__ == "__main__":
    B, n_ch, T, hidden = 2, 8, 32, 32        # -> T_seq = 8, 4H = 128 (lane dense)
    key = jax.random.PRNGKey(0)
    kx, kparams_key = jax.random.split(key)
    x = jax.random.normal(kx, (B, n_ch, T), dtype=jnp.float32)
    params = init_params(kparams_key, n_ch, hidden)

    kparams = precompute_params(params, n_ch, hidden)        # one-time repack
    fwd = jax.jit(cnn2d_lstm_forward)
    out = jax.block_until_ready(fwd(x, kparams))

    ref = jax.block_until_ready(ref_forward(x, params))
    err = float(jnp.max(jnp.abs(out - ref)))
    # bf16 matmul inputs (f32 accumulation, f32 LSTM state) vs f32 reference.
    if err > 2e-2:
        raise AssertionError(f"Pallas output mismatch vs reference: max|diff|={err}")

    assert out.shape == (B,)
    print("KERNEL_OK")
</pallas_src>

<mosaic_0001>
module attributes {stable_mosaic.version = 11 : i64} {
  func.func @_fused_forward_kernel(%arg0: memref<32x56xf32, #tpu.memory_space<vmem>>, %arg1: memref<56x256xbf16, #tpu.memory_space<vmem>>, %arg2: memref<1x256xf32, #tpu.memory_space<vmem>>, %arg3: memref<5x256x64xbf16, #tpu.memory_space<vmem>>, %arg4: memref<1x64xf32, #tpu.memory_space<vmem>>, %arg5: memref<5x64x128xbf16, #tpu.memory_space<vmem>>, %arg6: memref<1x128xf32, #tpu.memory_space<vmem>>, %arg7: memref<128x128xbf16, #tpu.memory_space<vmem>>, %arg8: memref<1x128xf32, #tpu.memory_space<vmem>>, %arg9: memref<32x128xf32, #tpu.memory_space<vmem>>, %arg10: memref<32x1xf32, #tpu.memory_space<vmem>>, %arg11: memref<1x1xf32, #tpu.memory_space<vmem>>, %arg12: memref<2x1xf32, #tpu.memory_space<vmem>>, %arg13: memref<40x256xf32, #tpu.memory_space<vmem>>, %arg14: memref<40x64xf32, #tpu.memory_space<vmem>>) attributes {dimension_semantics = [], scalar_prefetch = 0 : i64, scratch_operands = 2 : i64, tpu.core_type = #tpu.core_type<tc>} {
    %c0 = arith.constant 0 : index
    %c0_0 = arith.constant 0 : index
    %0 = vector.load %arg0[%c0, %c0_0] : memref<32x56xf32, #tpu.memory_space<vmem>>, vector<32x56xf32>
    %1 = arith.truncf %0 : vector<32x56xf32> to vector<32x56xbf16>
    %c0_1 = arith.constant 0 : index
    %c0_2 = arith.constant 0 : index
    %2 = vector.load %arg1[%c0_1, %c0_2] : memref<56x256xbf16, #tpu.memory_space<vmem>>, vector<56x256xbf16>
    %cst = arith.constant dense<0.000000e+00> : vector<32x256xf32>
    %3 = tpu.matmul %1, %2, %cst {dimension_numbers = #tpu.dot_dimension_numbers<[1], [0], [0], [1], [0, 0, 1, 1], [], []>} : vector<32x56xbf16>, vector<56x256xbf16>, vector<32x256xf32> -> vector<32x256xf32>
    %c0_3 = arith.constant 0 : index
    %c0_4 = arith.constant 0 : index
    %4 = vector.load %arg2[%c0_3, %c0_4] : memref<1x256xf32, #tpu.memory_space<vmem>>, vector<1x256xf32>
    %5 = vector.broadcast %4 : vector<1x256xf32> to vector<32x256xf32>
    %6 = arith.addf %3, %5 : vector<32x256xf32>
    %cst_5 = arith.constant 0.000000e+00 : f32
    %7 = vector.broadcast %cst_5 : f32 to vector<32x256xf32>
    %8 = arith.maximumf %6, %7 : vector<32x256xf32>
    %cst_6 = arith.constant 0.000000e+00 : f32
    %9 = vector.broadcast %cst_6 : f32 to vector<40x256xf32>
    %c0_7 = arith.constant 0 : index
    %c0_8 = arith.constant 0 : index
    %10 = vector.load %arg13[%c0_7, %c0_8] : memref<40x256xf32, #tpu.memory_space<vmem>>, vector<40x256xf32>
    tpu.vector_store %arg13[%c0_7, %c0_8], %9 {strides = array<i32>} : memref<40x256xf32, #tpu.memory_space<vmem>>, vector<40x256xf32>,
    %c4 = arith.constant 4 : index
    %c0_9 = arith.constant 0 : index
    %11 = vector.load %arg13[%c4, %c0_9] : memref<40x256xf32, #tpu.memory_space<vmem>>, vector<32x256xf32>
    tpu.vector_store %arg13[%c4, %c0_9], %8 {strides = array<i32>} : memref<40x256xf32, #tpu.memory_space<vmem>>, vector<32x256xf32>,
    %cst_10 = arith.constant 0.000000e+00 : f32
    %12 = vector.broadcast %cst_10 : f32 to vector<32x64xf32>
    %c0_11 = arith.constant 0 : index
    %c0_12 = arith.constant 0 : index
    %13 = vector.load %arg13[%c0_11, %c0_12] : memref<40x256xf32, #tpu.memory_space<vmem>>, vector<32x256xf32>
    %14 = arith.truncf %13 : vector<32x256xf32> to vector<32x256xbf16>
    %c0_13 = arith.constant 0 : index
    %c0_14 = arith.constant 0 : index
    %c0_15 = arith.constant 0 : index
    %15 = vector.load %arg3[%c0_13, %c0_14, %c0_15] : memref<5x256x64xbf16, #tpu.memory_space<vmem>>, vector<1x256x64xbf16>
    %16 = vector.shape_cast %15 : vector<1x256x64xbf16> to vector<256x64xbf16>
    %cst_16 = arith.constant dense<0.000000e+00> : vector<32x64xf32>
    %17 = tpu.matmul %14, %16, %cst_16 {dimension_numbers = #tpu.dot_dimension_numbers<[1], [0], [0], [1], [0, 0, 1, 1], [], []>} : vector<32x256xbf16>, vector<256x64xbf16>, vector<32x64xf32> -> vector<32x64xf32>
    %18 = arith.addf %12, %17 : vector<32x64xf32>
    %c2 = arith.constant 2 : index
    %c0_17 = arith.constant 0 : index
    %19 = vector.load %arg13[%c2, %c0_17] : memref<40x256xf32, #tpu.memory_space<vmem>>, vector<32x256xf32>
    %20 = arith.truncf %19 : vector<32x256xf32> to vector<32x256xbf16>
    %c1 = arith.constant 1 : index
    %c0_18 = arith.constant 0 : index
    %c0_19 = arith.constant 0 : index
    %21 = vector.load %arg3[%c1, %c0_18, %c0_19] : memref<5x256x64xbf16, #tpu.memory_space<vmem>>, vector<1x256x64xbf16>
    %22 = vector.shape_cast %21 : vector<1x256x64xbf16> to vector<256x64xbf16>
    %cst_20 = arith.constant dense<0.000000e+00> : vector<32x64xf32>
    %23 = tpu.matmul %20, %22, %cst_20 {dimension_numbers = #tpu.dot_dimension_numbers<[1], [0], [0], [1], [0, 0, 1, 1], [], []>} : vector<32x256xbf16>, vector<256x64xbf16>, vector<32x64xf32> -> vector<32x64xf32>
    %24 = arith.addf %18, %23 : vector<32x64xf32>
    %c4_21 = arith.constant 4 : index
    %c0_22 = arith.constant 0 : index
    %25 = vector.load %arg13[%c4_21, %c0_22] : memref<40x256xf32, #tpu.memory_space<vmem>>, vector<32x256xf32>
    %26 = arith.truncf %25 : vector<32x256xf32> to vector<32x256xbf16>
    %c2_23 = arith.constant 2 : index
    %c0_24 = arith.constant 0 : index
    %c0_25 = arith.constant 0 : index
    %27 = vector.load %arg3[%c2_23, %c0_24, %c0_25] : memref<5x256x64xbf16, #tpu.memory_space<vmem>>, vector<1x256x64xbf16>
    %28 = vector.shape_cast %27 : vector<1x256x64xbf16> to vector<256x64xbf16>
    %cst_26 = arith.constant dense<0.000000e+00> : vector<32x64xf32>
    %29 = tpu.matmul %26, %28, %cst_26 {dimension_numbers = #tpu.dot_dimension_numbers<[1], [0], [0], [1], [0, 0, 1, 1], [], []>} : vector<32x256xbf16>, vector<256x64xbf16>, vector<32x64xf32> -> vector<32x64xf32>
    %30 = arith.addf %24, %29 : vector<32x64xf32>
    %c6 = arith.constant 6 : index
    %c0_27 = arith.constant 0 : index
    %31 = vector.load %arg13[%c6, %c0_27] : memref<40x256xf32, #tpu.memory_space<vmem>>, vector<32x256xf32>
    %32 = arith.truncf %31 : vector<32x256xf32> to vector<32x256xbf16>
    %c3 = arith.constant 3 : index
    %c0_28 = arith.constant 0 : index
    %c0_29 = arith.constant 0 : index
    %33 = vector.load %arg3[%c3, %c0_28, %c0_29] : memref<5x256x64xbf16, #tpu.memory_space<vmem>>, vector<1x256x64xbf16>
    %34 = vector.shape_cast %33 : vector<1x256x64xbf16> to vector<256x64xbf16>
    %cst_30 = arith.constant dense<0.000000e+00> : vector<32x64xf32>
    %35 = tpu.matmul %32, %34, %cst_30 {dimension_numbers = #tpu.dot_dimension_numbers<[1], [0], [0], [1], [0, 0, 1, 1], [], []>} : vector<32x256xbf16>, vector<256x64xbf16>, vector<32x64xf32> -> vector<32x64xf32>
    %36 = arith.addf %30, %35 : vector<32x64xf32>
    %c8 = arith.constant 8 : index
    %c0_31 = arith.constant 0 : index
    %37 = vector.load %arg13[%c8, %c0_31] : memref<40x256xf32, #tpu.memory_space<vmem>>, vector<32x256xf32>
    %38 = arith.truncf %37 : vector<32x256xf32> to vector<32x256xbf16>
    %c4_32 = arith.constant 4 : index
    %c0_33 = arith.constant 0 : index
    %c0_34 = arith.constant 0 : index
    %39 = vector.load %arg3[%c4_32, %c0_33, %c0_34] : memref<5x256x64xbf16, #tpu.memory_space<vmem>>, vector<1x256x64xbf16>
    %40 = vector.shape_cast %39 : vector<1x256x64xbf16> to vector<256x64xbf16>
    %cst_35 = arith.constant dense<0.000000e+00> : vector<32x64xf32>
    %41 = tpu.matmul %38, %40, %cst_35 {dimension_numbers = #tpu.dot_dimension_numbers<[1], [0], [0], [1], [0, 0, 1, 1], [], []>} : vector<32x256xbf16>, vector<256x64xbf16>, vector<32x64xf32> -> vector<32x64xf32>
    %42 = arith.addf %36, %41 : vector<32x64xf32>
    %c0_36 = arith.constant 0 : index
    %c0_37 = arith.constant 0 : index
    %43 = vector.load %arg4[%c0_36, %c0_37] : memref<1x64xf32, #tpu.memory_space<vmem>>, vector<1x64xf32>
    %44 = vector.broadcast %43 : vector<1x64xf32> to vector<32x64xf32>
    %45 = arith.addf %42, %44 : vector<32x64xf32>
    %cst_38 = arith.constant 0.000000e+00 : f32
    %46 = vector.broadcast %cst_38 : f32 to vector<32x64xf32>
    %47 = arith.maximumf %45, %46 : vector<32x64xf32>
    %cst_39 = arith.constant 0.000000e+00 : f32
    %48 = vector.broadcast %cst_39 : f32 to vector<40x64xf32>
    %c0_40 = arith.constant 0 : index
    %c0_41 = arith.constant 0 : index
    %49 = vector.load %arg14[%c0_40, %c0_41] : memref<40x64xf32, #tpu.memory_space<vmem>>, vector<40x64xf32>
    tpu.vector_store %arg14[%c0_40, %c0_41], %48 {strides = array<i32>} : memref<40x64xf32, #tpu.memory_space<vmem>>, vector<40x64xf32>,
    %c4_42 = arith.constant 4 : index
    %c0_43 = arith.constant 0 : index
    %50 = vector.load %arg14[%c4_42, %c0_43] : memref<40x64xf32, #tpu.memory_space<vmem>>, vector<32x64xf32>
    tpu.vector_store %arg14[%c4_42, %c0_43], %47 {strides = array<i32>} : memref<40x64xf32, #tpu.memory_space<vmem>>, vector<32x64xf32>,
    %cst_44 = arith.constant 0.000000e+00 : f32
    %51 = vector.broadcast %cst_44 : f32 to vector<32x128xf32>
    %c0_45 = arith.constant 0 : index
    %c0_46 = arith.constant 0 : index
    %52 = vector.load %arg14[%c0_45, %c0_46] : memref<40x64xf32, #tpu.memory_space<vmem>>, vector<32x64xf32>
    %53 = arith.truncf %52 : vector<32x64xf32> to vector<32x64xbf16>
    %c0_47 = arith.constant 0 : index
    %c0_48 = arith.constant 0 : index
    %c0_49 = arith.constant 0 : index
    %54 = vector.load %arg5[%c0_47, %c0_48, %c0_49] : memref<5x64x128xbf16, #tpu.memory_space<vmem>>, vector<1x64x128xbf16>
    %55 = vector.shape_cast %54 : vector<1x64x128xbf16> to vector<64x128xbf16>
    %cst_50 = arith.constant dense<0.000000e+00> : vector<32x128xf32>
    %56 = tpu.matmul %53, %55, %cst_50 {dimension_numbers = #tpu.dot_dimension_numbers<[1], [0], [0], [1], [0, 0, 1, 1], [], []>} : vector<32x64xbf16>, vector<64x128xbf16>, vector<32x128xf32> -> vector<32x128xf32>
    %57 = arith.addf %51, %56 : vector<32x128xf32>
    %c2_51 = arith.constant 2 : index
    %c0_52 = arith.constant 0 : index
    %58 = vector.load %arg14[%c2_51, %c0_52] : memref<40x64xf32, #tpu.memory_space<vmem>>, vector<32x64xf32>
    %59 = arith.truncf %58 : vector<32x64xf32> to vector<32x64xbf16>
    %c1_53 = arith.constant 1 : index
    %c0_54 = arith.constant 0 : index
    %c0_55 = arith.constant 0 : index
    %60 = vector.load %arg5[%c1_53, %c0_54, %c0_55] : memref<5x64x128xbf16, #tpu.memory_space<vmem>>, vector<1x64x128xbf16>
    %61 = vector.shape_cast %60 : vector<1x64x128xbf16> to vector<64x128xbf16>
    %cst_56 = arith.constant dense<0.000000e+00> : vector<32x128xf32>
    %62 = tpu.matmul %59, %61, %cst_56 {dimension_numbers = #tpu.dot_dimension_numbers<[1], [0], [0], [1], [0, 0, 1, 1], [], []>} : vector<32x64xbf16>, vector<64x128xbf16>, vector<32x128xf32> -> vector<32x128xf32>
    %63 = arith.addf %57, %62 : vector<32x128xf32>
    %c4_57 = arith.constant 4 : index
    %c0_58 = arith.constant 0 : index
    %64 = vector.load %arg14[%c4_57, %c0_58] : memref<40x64xf32, #tpu.memory_space<vmem>>, vector<32x64xf32>
    %65 = arith.truncf %64 : vector<32x64xf32> to vector<32x64xbf16>
    %c2_59 = arith.constant 2 : index
    %c0_60 = arith.constant 0 : index
    %c0_61 = arith.constant 0 : index
    %66 = vector.load %arg5[%c2_59, %c0_60, %c0_61] : memref<5x64x128xbf16, #tpu.memory_space<vmem>>, vector<1x64x128xbf16>
    %67 = vector.shape_cast %66 : vector<1x64x128xbf16> to vector<64x128xbf16>
    %cst_62 = arith.constant dense<0.000000e+00> : vector<32x128xf32>
    %68 = tpu.matmul %65, %67, %cst_62 {dimension_numbers = #tpu.dot_dimension_numbers<[1], [0], [0], [1], [0, 0, 1, 1], [], []>} : vector<32x64xbf16>, vector<64x128xbf16>, vector<32x128xf32> -> vector<32x128xf32>
    %69 = arith.addf %63, %68 : vector<32x128xf32>
    %c6_63 = arith.constant 6 : index
    %c0_64 = arith.constant 0 : index
    %70 = vector.load %arg14[%c6_63, %c0_64] : memref<40x64xf32, #tpu.memory_space<vmem>>, vector<32x64xf32>
    %71 = arith.truncf %70 : vector<32x64xf32> to vector<32x64xbf16>
    %c3_65 = arith.constant 3 : index
    %c0_66 = arith.constant 0 : index
    %c0_67 = arith.constant 0 : index
    %72 = vector.load %arg5[%c3_65, %c0_66, %c0_67] : memref<5x64x128xbf16, #tpu.memory_space<vmem>>, vector<1x64x128xbf16>
    %73 = vector.shape_cast %72 : vector<1x64x128xbf16> to vector<64x128xbf16>
    %cst_68 = arith.constant dense<0.000000e+00> : vector<32x128xf32>
    %74 = tpu.matmul %71, %73, %cst_68 {dimension_numbers = #tpu.dot_dimension_numbers<[1], [0], [0], [1], [0, 0, 1, 1], [], []>} : vector<32x64xbf16>, vector<64x128xbf16>, vector<32x128xf32> -> vector<32x128xf32>
    %75 = arith.addf %69, %74 : vector<32x128xf32>
    %c8_69 = arith.constant 8 : index
    %c0_70 = arith.constant 0 : index
    %76 = vector.load %arg14[%c8_69, %c0_70] : memref<40x64xf32, #tpu.memory_space<vmem>>, vector<32x64xf32>
    %77 = arith.truncf %76 : vector<32x64xf32> to vector<32x64xbf16>
    %c4_71 = arith.constant 4 : index
    %c0_72 = arith.constant 0 : index
    %c0_73 = arith.constant 0 : index
    %78 = vector.load %arg5[%c4_71, %c0_72, %c0_73] : memref<5x64x128xbf16, #tpu.memory_space<vmem>>, vector<1x64x128xbf16>
    %79 = vector.shape_cast %78 : vector<1x64x128xbf16> to vector<64x128xbf16>
    %cst_74 = arith.constant dense<0.000000e+00> : vector<32x128xf32>
    %80 = tpu.matmul %77, %79, %cst_74 {dimension_numbers = #tpu.dot_dimension_numbers<[1], [0], [0], [1], [0, 0, 1, 1], [], []>} : vector<32x64xbf16>, vector<64x128xbf16>, vector<32x128xf32> -> vector<32x128xf32>
    %81 = arith.addf %75, %80 : vector<32x128xf32>
    %c0_75 = arith.constant 0 : index
    %c0_76 = arith.constant 0 : index
    %82 = vector.load %arg6[%c0_75, %c0_76] : memref<1x128xf32, #tpu.memory_space<vmem>>, vector<1x128xf32>
    %83 = vector.broadcast %82 : vector<1x128xf32> to vector<32x128xf32>
    %84 = arith.addf %81, %83 : vector<32x128xf32>
    %cst_77 = arith.constant 0.000000e+00 : f32
    %85 = vector.broadcast %cst_77 : f32 to vector<32x128xf32>
    %86 = arith.maximumf %84, %85 : vector<32x128xf32>
    %87 = arith.truncf %86 : vector<32x128xf32> to vector<32x128xbf16>
    %c0_78 = arith.constant 0 : index
    %c0_79 = arith.constant 0 : index
    %88 = vector.load %arg7[%c0_78, %c0_79] : memref<128x128xbf16, #tpu.memory_space<vmem>>, vector<128x128xbf16>
    %cst_80 = arith.constant dense<0.000000e+00> : vector<32x128xf32>
    %89 = tpu.matmul %87, %88, %cst_80 {dimension_numbers = #tpu.dot_dimension_numbers<[1], [0], [0], [1], [0, 0, 1, 1], [], []>} : vector<32x128xbf16>, vector<128x128xbf16>, vector<32x128xf32> -> vector<32x128xf32>
    %c0_81 = arith.constant 0 : index
    %c0_82 = arith.constant 0 : index
    %90 = vector.load %arg8[%c0_81, %c0_82] : memref<1x128xf32, #tpu.memory_space<vmem>>, vector<1x128xf32>
    %91 = vector.broadcast %90 : vector<1x128xf32> to vector<32x128xf32>
    %92 = arith.addf %89, %91 : vector<32x128xf32>
    %c0_83 = arith.constant 0 : index
    %c0_84 = arith.constant 0 : index
    %93 = vector.load %arg9[%c0_83, %c0_84] : memref<32x128xf32, #tpu.memory_space<vmem>>, vector<32x128xf32>
    %cst_85 = arith.constant 0.000000e+00 : f32
    %94 = vector.broadcast %cst_85 : f32 to vector<2x32xf32>
    %cst_86 = arith.constant 0.000000e+00 : f32
    %95 = vector.broadcast %cst_86 : f32 to vector<2x32xf32>
    %96 = vector.extract_strided_slice %92 {offsets = [0, 0], sizes = [2, 128], strides = [1, 1]} : vector<32x128xf32> to vector<2x128xf32>
    %cst_87 = arith.constant dense<0.000000e+00> : vector<2x128xf32>
    %97 = tpu.matmul %94, %93, %cst_87 {dimension_numbers = #tpu.dot_dimension_numbers<[1], [0], [0], [1], [0, 0, 1, 1], [], []>} : vector<2x32xf32>, vector<32x128xf32>, vector<2x128xf32> -> vector<2x128xf32>
    %98 = arith.addf %96, %97 : vector<2x128xf32>
    %99 = arith.negf %98 : vector<2x128xf32>
    %100 = math.exp %99 : vector<2x128xf32>
    %cst_88 = arith.constant 1.000000e+00 : f32
    %101 = vector.broadcast %cst_88 : f32 to vector<2x128xf32>
    %102 = arith.addf %101, %100 : vector<2x128xf32>
    %103 = arith.divf %101, %102 : vector<2x128xf32>
    %104 = math.tanh %98 : vector<2x128xf32>
    %105 = vector.extract_strided_slice %103 {offsets = [0, 0], sizes = [2, 32], strides = [1, 1]} : vector<2x128xf32> to vector<2x32xf32>
    %106 = vector.extract_strided_slice %103 {offsets = [0, 32], sizes = [2, 32], strides = [1, 1]} : vector<2x128xf32> to vector<2x32xf32>
    %107 = vector.extract_strided_slice %104 {offsets = [0, 64], sizes = [2, 32], strides = [1, 1]} : vector<2x128xf32> to vector<2x32xf32>
    %108 = vector.extract_strided_slice %103 {offsets = [0, 96], sizes = [2, 32], strides = [1, 1]} : vector<2x128xf32> to vector<2x32xf32>
    %109 = arith.mulf %106, %95 : vector<2x32xf32>
    %110 = arith.mulf %105, %107 : vector<2x32xf32>
    %111 = arith.addf %109, %110 : vector<2x32xf32>
    %112 = math.tanh %111 : vector<2x32xf32>
    %113 = arith.mulf %108, %112 : vector<2x32xf32>
    %114 = vector.extract_strided_slice %92 {offsets = [4, 0], sizes = [2, 128], strides = [1, 1]} : vector<32x128xf32> to vector<2x128xf32>
    %cst_89 = arith.constant dense<0.000000e+00> : vector<2x128xf32>
    %115 = tpu.matmul %113, %93, %cst_89 {dimension_numbers = #tpu.dot_dimension_numbers<[1], [0], [0], [1], [0, 0, 1, 1], [], []>} : vector<2x32xf32>, vector<32x128xf32>, vector<2x128xf32> -> vector<2x128xf32>
    %116 = arith.addf %114, %115 : vector<2x128xf32>
    %117 = arith.negf %116 : vector<2x128xf32>
    %118 = math.exp %117 : vector<2x128xf32>
    %cst_90 = arith.constant 1.000000e+00 : f32
    %119 = vector.broadcast %cst_90 : f32 to vector<2x128xf32>
    %120 = arith.addf %119, %118 : vector<2x128xf32>
    %121 = arith.divf %119, %120 : vector<2x128xf32>
    %122 = math.tanh %116 : vector<2x128xf32>
    %123 = vector.extract_strided_slice %121 {offsets = [0, 0], sizes = [2, 32], strides = [1, 1]} : vector<2x128xf32> to vector<2x32xf32>
    %124 = vector.extract_strided_slice %121 {offsets = [0, 32], sizes = [2, 32], strides = [1, 1]} : vector<2x128xf32> to vector<2x32xf32>
    %125 = vector.extract_strided_slice %122 {offsets = [0, 64], sizes = [2, 32], strides = [1, 1]} : vector<2x128xf32> to vector<2x32xf32>
    %126 = vector.extract_strided_slice %121 {offsets = [0, 96], sizes = [2, 32], strides = [1, 1]} : vector<2x128xf32> to vector<2x32xf32>
    %127 = arith.mulf %124, %111 : vector<2x32xf32>
    %128 = arith.mulf %123, %125 : vector<2x32xf32>
    %129 = arith.addf %127, %128 : vector<2x32xf32>
    %130 = math.tanh %129 : vector<2x32xf32>
    %131 = arith.mulf %126, %130 : vector<2x32xf32>
    %132 = vector.extract_strided_slice %92 {offsets = [8, 0], sizes = [2, 128], strides = [1, 1]} : vector<32x128xf32> to vector<2x128xf32>
    %cst_91 = arith.constant dense<0.000000e+00> : vector<2x128xf32>
    %133 = tpu.matmul %131, %93, %cst_91 {dimension_numbers = #tpu.dot_dimension_numbers<[1], [0], [0], [1], [0, 0, 1, 1], [], []>} : vector<2x32xf32>, vector<32x128xf32>, vector<2x128xf32> -> vector<2x128xf32>
    %134 = arith.addf %132, %133 : vector<2x128xf32>
    %135 = arith.negf %134 : vector<2x128xf32>
    %136 = math.exp %135 : vector<2x128xf32>
    %cst_92 = arith.constant 1.000000e+00 : f32
    %137 = vector.broadcast %cst_92 : f32 to vector<2x128xf32>
    %138 = arith.addf %137, %136 : vector<2x128xf32>
    %139 = arith.divf %137, %138 : vector<2x128xf32>
    %140 = math.tanh %134 : vector<2x128xf32>
    %141 = vector.extract_strided_slice %139 {offsets = [0, 0], sizes = [2, 32], strides = [1, 1]} : vector<2x128xf32> to vector<2x32xf32>
    %142 = vector.extract_strided_slice %139 {offsets = [0, 32], sizes = [2, 32], strides = [1, 1]} : vector<2x128xf32> to vector<2x32xf32>
    %143 = vector.extract_strided_slice %140 {offsets = [0, 64], sizes = [2, 32], strides = [1, 1]} : vector<2x128xf32> to vector<2x32xf32>
    %144 = vector.extract_strided_slice %139 {offsets = [0, 96], sizes = [2, 32], strides = [1, 1]} : vector<2x128xf32> to vector<2x32xf32>
    %145 = arith.mulf %142, %129 : vector<2x32xf32>
    %146 = arith.mulf %141, %143 : vector<2x32xf32>
    %147 = arith.addf %145, %146 : vector<2x32xf32>
    %148 = math.tanh %147 : vector<2x32xf32>
    %149 = arith.mulf %144, %148 : vector<2x32xf32>
    %150 = vector.extract_strided_slice %92 {offsets = [12, 0], sizes = [2, 128], strides = [1, 1]} : vector<32x128xf32> to vector<2x128xf32>
    %cst_93 = arith.constant dense<0.000000e+00> : vector<2x128xf32>
    %151 = tpu.matmul %149, %93, %cst_93 {dimension_numbers = #tpu.dot_dimension_numbers<[1], [0], [0], [1], [0, 0, 1, 1], [], []>} : vector<2x32xf32>, vector<32x128xf32>, vector<2x128xf32> -> vector<2x128xf32>
    %152 = arith.addf %150, %151 : vector<2x128xf32>
    %153 = arith.negf %152 : vector<2x128xf32>
    %154 = math.exp %153 : vector<2x128xf32>
    %cst_94 = arith.constant 1.000000e+00 : f32
    %155 = vector.broadcast %cst_94 : f32 to vector<2x128xf32>
    %156 = arith.addf %155, %154 : vector<2x128xf32>
    %157 = arith.divf %155, %156 : vector<2x128xf32>
    %158 = math.tanh %152 : vector<2x128xf32>
    %159 = vector.extract_strided_slice %157 {offsets = [0, 0], sizes = [2, 32], strides = [1, 1]} : vector<2x128xf32> to vector<2x32xf32>
    %160 = vector.extract_strided_slice %157 {offsets = [0, 32], sizes = [2, 32], strides = [1, 1]} : vector<2x128xf32> to vector<2x32xf32>
    %161 = vector.extract_strided_slice %158 {offsets = [0, 64], sizes = [2, 32], strides = [1, 1]} : vector<2x128xf32> to vector<2x32xf32>
    %162 = vector.extract_strided_slice %157 {offsets = [0, 96], sizes = [2, 32], strides = [1, 1]} : vector<2x128xf32> to vector<2x32xf32>
    %163 = arith.mulf %160, %147 : vector<2x32xf32>
    %164 = arith.mulf %159, %161 : vector<2x32xf32>
    %165 = arith.addf %163, %164 : vector<2x32xf32>
    %166 = math.tanh %165 : vector<2x32xf32>
    %167 = arith.mulf %162, %166 : vector<2x32xf32>
    %168 = vector.extract_strided_slice %92 {offsets = [16, 0], sizes = [2, 128], strides = [1, 1]} : vector<32x128xf32> to vector<2x128xf32>
    %cst_95 = arith.constant dense<0.000000e+00> : vector<2x128xf32>
    %169 = tpu.matmul %167, %93, %cst_95 {dimension_numbers = #tpu.dot_dimension_numbers<[1], [0], [0], [1], [0, 0, 1, 1], [], []>} : vector<2x32xf32>, vector<32x128xf32>, vector<2x128xf32> -> vector<2x128xf32>
    %170 = arith.addf %168, %169 : vector<2x128xf32>
    %171 = arith.negf %170 : vector<2x128xf32>
    %172 = math.exp %171 : vector<2x128xf32>
    %cst_96 = arith.constant 1.000000e+00 : f32
    %173 = vector.broadcast %cst_96 : f32 to vector<2x128xf32>
    %174 = arith.addf %173, %172 : vector<2x128xf32>
    %175 = arith.divf %173, %174 : vector<2x128xf32>
    %176 = math.tanh %170 : vector<2x128xf32>
    %177 = vector.extract_strided_slice %175 {offsets = [0, 0], sizes = [2, 32], strides = [1, 1]} : vector<2x128xf32> to vector<2x32xf32>
    %178 = vector.extract_strided_slice %175 {offsets = [0, 32], sizes = [2, 32], strides = [1, 1]} : vector<2x128xf32> to vector<2x32xf32>
    %179 = vector.extract_strided_slice %176 {offsets = [0, 64], sizes = [2, 32], strides = [1, 1]} : vector<2x128xf32> to vector<2x32xf32>
    %180 = vector.extract_strided_slice %175 {offsets = [0, 96], sizes = [2, 32], strides = [1, 1]} : vector<2x128xf32> to vector<2x32xf32>
    %181 = arith.mulf %178, %165 : vector<2x32xf32>
    %182 = arith.mulf %177, %179 : vector<2x32xf32>
    %183 = arith.addf %181, %182 : vector<2x32xf32>
    %184 = math.tanh %183 : vector<2x32xf32>
    %185 = arith.mulf %180, %184 : vector<2x32xf32>
    %186 = vector.extract_strided_slice %92 {offsets = [20, 0], sizes = [2, 128], strides = [1, 1]} : vector<32x128xf32> to vector<2x128xf32>
    %cst_97 = arith.constant dense<0.000000e+00> : vector<2x128xf32>
    %187 = tpu.matmul %185, %93, %cst_97 {dimension_numbers = #tpu.dot_dimension_numbers<[1], [0], [0], [1], [0, 0, 1, 1], [], []>} : vector<2x32xf32>, vector<32x128xf32>, vector<2x128xf32> -> vector<2x128xf32>
    %188 = arith.addf %186, %187 : vector<2x128xf32>
    %189 = arith.negf %188 : vector<2x128xf32>
    %190 = math.exp %189 : vector<2x128xf32>
    %cst_98 = arith.constant 1.000000e+00 : f32
    %191 = vector.broadcast %cst_98 : f32 to vector<2x128xf32>
    %192 = arith.addf %191, %190 : vector<2x128xf32>
    %193 = arith.divf %191, %192 : vector<2x128xf32>
    %194 = math.tanh %188 : vector<2x128xf32>
    %195 = vector.extract_strided_slice %193 {offsets = [0, 0], sizes = [2, 32], strides = [1, 1]} : vector<2x128xf32> to vector<2x32xf32>
    %196 = vector.extract_strided_slice %193 {offsets = [0, 32], sizes = [2, 32], strides = [1, 1]} : vector<2x128xf32> to vector<2x32xf32>
    %197 = vector.extract_strided_slice %194 {offsets = [0, 64], sizes = [2, 32], strides = [1, 1]} : vector<2x128xf32> to vector<2x32xf32>
    %198 = vector.extract_strided_slice %193 {offsets = [0, 96], sizes = [2, 32], strides = [1, 1]} : vector<2x128xf32> to vector<2x32xf32>
    %199 = arith.mulf %196, %183 : vector<2x32xf32>
    %200 = arith.mulf %195, %197 : vector<2x32xf32>
    %201 = arith.addf %199, %200 : vector<2x32xf32>
    %202 = math.tanh %201 : vector<2x32xf32>
    %203 = arith.mulf %198, %202 : vector<2x32xf32>
    %204 = vector.extract_strided_slice %92 {offsets = [24, 0], sizes = [2, 128], strides = [1, 1]} : vector<32x128xf32> to vector<2x128xf32>
    %cst_99 = arith.constant dense<0.000000e+00> : vector<2x128xf32>
    %205 = tpu.matmul %203, %93, %cst_99 {dimension_numbers = #tpu.dot_dimension_numbers<[1], [0], [0], [1], [0, 0, 1, 1], [], []>} : vector<2x32xf32>, vector<32x128xf32>, vector<2x128xf32> -> vector<2x128xf32>
    %206 = arith.addf %204, %205 : vector<2x128xf32>
    %207 = arith.negf %206 : vector<2x128xf32>
    %208 = math.exp %207 : vector<2x128xf32>
    %cst_100 = arith.constant 1.000000e+00 : f32
    %209 = vector.broadcast %cst_100 : f32 to vector<2x128xf32>
    %210 = arith.addf %209, %208 : vector<2x128xf32>
    %211 = arith.divf %209, %210 : vector<2x128xf32>
    %212 = math.tanh %206 : vector<2x128xf32>
    %213 = vector.extract_strided_slice %211 {offsets = [0, 0], sizes = [2, 32], strides = [1, 1]} : vector<2x128xf32> to vector<2x32xf32>
    %214 = vector.extract_strided_slice %211 {offsets = [0, 32], sizes = [2, 32], strides = [1, 1]} : vector<2x128xf32> to vector<2x32xf32>
    %215 = vector.extract_strided_slice %212 {offsets = [0, 64], sizes = [2, 32], strides = [1, 1]} : vector<2x128xf32> to vector<2x32xf32>
    %216 = vector.extract_strided_slice %211 {offsets = [0, 96], sizes = [2, 32], strides = [1, 1]} : vector<2x128xf32> to vector<2x32xf32>
    %217 = arith.mulf %214, %201 : vector<2x32xf32>
    %218 = arith.mulf %213, %215 : vector<2x32xf32>
    %219 = arith.addf %217, %218 : vector<2x32xf32>
    %220 = math.tanh %219 : vector<2x32xf32>
    %221 = arith.mulf %216, %220 : vector<2x32xf32>
    %222 = vector.extract_strided_slice %92 {offsets = [28, 0], sizes = [2, 128], strides = [1, 1]} : vector<32x128xf32> to vector<2x128xf32>
    %cst_101 = arith.constant dense<0.000000e+00> : vector<2x128xf32>
    %223 = tpu.matmul %221, %93, %cst_101 {dimension_numbers = #tpu.dot_dimension_numbers<[1], [0], [0], [1], [0, 0, 1, 1], [], []>} : vector<2x32xf32>, vector<32x128xf32>, vector<2x128xf32> -> vector<2x128xf32>
    %224 = arith.addf %222, %223 : vector<2x128xf32>
    %225 = arith.negf %224 : vector<2x128xf32>
    %226 = math.exp %225 : vector<2x128xf32>
    %cst_102 = arith.constant 1.000000e+00 : f32
    %227 = vector.broadcast %cst_102 : f32 to vector<2x128xf32>
    %228 = arith.addf %227, %226 : vector<2x128xf32>
    %229 = arith.divf %227, %228 : vector<2x128xf32>
    %230 = math.tanh %224 : vector<2x128xf32>
    %231 = vector.extract_strided_slice %229 {offsets = [0, 0], sizes = [2, 32], strides = [1, 1]} : vector<2x128xf32> to vector<2x32xf32>
    %232 = vector.extract_strided_slice %229 {offsets = [0, 32], sizes = [2, 32], strides = [1, 1]} : vector<2x128xf32> to vector<2x32xf32>
    %233 = vector.extract_strided_slice %230 {offsets = [0, 64], sizes = [2, 32], strides = [1, 1]} : vector<2x128xf32> to vector<2x32xf32>
    %234 = vector.extract_strided_slice %229 {offsets = [0, 96], sizes = [2, 32], strides = [1, 1]} : vector<2x128xf32> to vector<2x32xf32>
    %235 = arith.mulf %232, %219 : vector<2x32xf32>
    %236 = arith.mulf %231, %233 : vector<2x32xf32>
    %237 = arith.addf %235, %236 : vector<2x32xf32>
    %238 = math.tanh %237 : vector<2x32xf32>
    %239 = arith.mulf %234, %238 : vector<2x32xf32>
    %c0_103 = arith.constant 0 : index
    %c0_104 = arith.constant 0 : index
    %240 = vector.load %arg10[%c0_103, %c0_104] : memref<32x1xf32, #tpu.memory_space<vmem>>, vector<32x1xf32>
    %cst_105 = arith.constant dense<0.000000e+00> : vector<2x1xf32>
    %241 = tpu.matmul %239, %240, %cst_105 {dimension_numbers = #tpu.dot_dimension_numbers<[1], [0], [0], [1], [0, 0, 1, 1], [], []>} : vector<2x32xf32>, vector<32x1xf32>, vector<2x1xf32> -> vector<2x1xf32>
    %c0_106 = arith.constant 0 : index
    %c0_107 = arith.constant 0 : index
    %242 = vector.load %arg11[%c0_106, %c0_107] : memref<1x1xf32, #tpu.memory_space<vmem>>, vector<1x1xf32>
    %243 = vector.broadcast %242 : vector<1x1xf32> to vector<2x1xf32>
    %244 = arith.addf %241, %243 : vector<2x1xf32>
    %245 = arith.negf %244 : vector<2x1xf32>
    %246 = math.exp %245 : vector<2x1xf32>
    %cst_108 = arith.constant 1.000000e+00 : f32
    %247 = vector.broadcast %cst_108 : f32 to vector<2x1xf32>
    %248 = arith.addf %247, %246 : vector<2x1xf32>
    %249 = arith.divf %247, %248 : vector<2x1xf32>
    %c0_109 = arith.constant 0 : index
    %c0_110 = arith.constant 0 : index
    %250 = vector.load %arg12[%c0_109, %c0_110] : memref<2x1xf32, #tpu.memory_space<vmem>>, vector<2x1xf32>
    tpu.vector_store %arg12[%c0_109, %c0_110], %249 {strides = array<i32>} : memref<2x1xf32, #tpu.memory_space<vmem>>, vector<2x1xf32>,
    return
  }
}

</mosaic_0001>

<bundles_post_ra>
// kernel: cnn2d_lstm_forward.1
= control target key start
LH: loop header
LB: loop body
LE: loop exit
PB: predicated region body
PF: predicated region fallthrough
CT: control target
= control target key end

     0   :  { %v3799_v1 = vmov 0   ;;  %vm111_vm0 = vcmask 1043456   ;;  %vm104_vm1 = vcmask 457728   ;;  %v3800_v35 = vmov 0.0   ;;  %s3803_s20 = smov 64   ;;  %s4506_s1 = inlined_call_operand.vmem [shape: bf16[56,256], index: 1, kind: input, shape index: {}]   ;;  %s4507_s3 = inlined_call_operand.vmem [shape: bf16[5,256,64], index: 3, kind: input, shape index: {}]   ;;  %s4508_s0 = inlined_call_operand.vmem [shape: f32[32,56], index: 0, kind: input, shape index: {}]   ;;  %s4509_s2 = inlined_call_operand.vmem [shape: f32[1,256], index: 2, kind: input, shape index: {}]   ;;  %s4510_s5 = inlined_call_operand.vmem [shape: bf16[5,64,128], index: 5, kind: input, shape index: {}]   ;;  %s4511_s7 = inlined_call_operand.vmem [shape: bf16[128,128], index: 7, kind: input, shape index: {}]   ;;  %s4512_s4 = inlined_call_operand.vmem [shape: f32[1,64], index: 4, kind: input, shape index: {}]   ;;  %s4513_s9 = inlined_call_operand.vmem [shape: f32[32,128], index: 9, kind: input, shape index: {}]   ;;  %s4514_s6 = inlined_call_operand.vmem [shape: f32[1,128], index: 6, kind: input, shape index: {}]   ;;  %s4515_s8 = inlined_call_operand.vmem [shape: f32[1,128], index: 8, kind: input, shape index: {}]   ;;  %s4516_s10 = inlined_call_operand.vmem [shape: f32[32,1], index: 10, kind: input, shape index: {}]   ;;  %s4517_s11 = inlined_call_operand.<no memory space> [shape: f32[1,1], index: 11, kind: input, shape index: {}]   ;;  %s4518_s12 = inlined_call_operand.vmem [shape: f32[2,1], index: 12, kind: output, shape index: {}]  }
   0x1   :  { %v3612_v0 = vld [vmem:[%s4506_s1 + $0x4] ss:$8 sps:$4 sm:$0xff]   ;;  %150 = vmatprep.mubr.bf16.mxu0 %v3799_v1  ;;  %v3614_v2 = vld [vmem:[%s4506_s1] ss:$8 sps:$4 sm:$0xff]   ;;  %v3615_v3 = vld [vmem:[%s4506_s1 + $0x14] ss:$8 sps:$4 sm:$0xff]   ;;  %v59_v52 = vlaneseq }
   0x2   :  { %118 = vmatprep.subr.bf16.mxu0 %v3612_v0  ;;  %v3617_v4 = vld [vmem:[%s4506_s1 + $0x10] ss:$8 sps:$4 sm:$0xff]   ;;  %v3618_v5 = vld [vmem:[%s4506_s1 + $0x24] ss:$8 sps:$4 sm:$0xff]   ;;  %v3620_v7 = vld [vmem:[%s4506_s1 + $0x20] ss:$8 sps:$4 sm:$0xff]  }
   0x3   :  { %119 = vmatpush1.bf16.msra.mxu0 %v3614_v2  ;;  %v56_v6 = vld [vmem:[%s4506_s1 + $0x30] sm:$0xff]  ;;  %v44_v10 = vld [vmem:[%s4508_s0] sm:$0xff]  ;;  %v45_v12 = vld [vmem:[%s4508_s0 + $0x8] sm:$0xff]  ;;  %179 = vst [vmem:[#allocation2] sm:$0xff] %v3800_v35  ;;  %v60_v53 = vshrl.u32 %v59_v52, 7  ;;  %vm330_vm2 = vcmask 1046528  }
   0x4   :  { %120 = vmatprep.subr.bf16.mxu0 %v3615_v3  ;;  %v2828_v8 = vcombine.low %v56_v6, %v56_v6  ;;  %v2829_v9 = vcombine.high %v56_v6, %v56_v6  ;;  %v3623_v13 = vld [vmem:[%s4507_s3 + $0x40] sm:$0xff]   ;;  %v48_v15 = vpack.c.bf16 %v45_v12, %v44_v10  ;;  %v3625_v16 = vld [vmem:[%s4507_s3 + $0x48] sm:$0xff]   ;;  %v46_v17 = vld [vmem:[%s4508_s0 + $0x10] sm:$0xff]  ;;  %180 = vst [vmem:[#allocation2 + $0x8] sm:$0xff] %v3800_v35  ;;  %vm889_vm3 = vcmask 1044480  }
   0x5   :  { %v3624_v14 = vld [vmem:[%s4507_s3] sm:$0xff]   ;;  %v47_v18 = vld [vmem:[%s4508_s0 + $0x18] sm:$0xff]  ;;  %v3626_v19 = vld [vmem:[%s4507_s3 + $0x8] sm:$0xff]   ;;  %187 = vst [vmem:[#allocation2 + $0x40] sm:$0xff] %v3800_v35  ;;  %v61_v54 = vsub.s32 0, %v60_v53  ;;  %v65_v56 = vsub.s32 1, %v60_v53 }
   0x6   :  { %v113_v11 = vsel %vm111_vm0, %v2828_v8, 0  ;;  %v3627_v20 = vld [vmem:[%s4507_s3 + $0x50] sm:$0xff]   ;;  %v49_v22 = vpack.c.bf16 %v47_v18, %v46_v17  ;;  %v3629_v23 = vld [vmem:[%s4507_s3 + $0xc0] sm:$0xff]   ;;  %v3633_v25 = vld [vmem:[%s4507_s3 + $0xc8] sm:$0xff]   ;;  %188 = vst [vmem:[#allocation2 + $0x48] sm:$0xff] %v3800_v35  ;;  %vm680_vm4 = vcmask 1045504  }
   0x7   :  { %121 = vmatpush1.bf16.msra.mxu0 %v3617_v4  ;;  %v3628_v21 = vld [vmem:[%s4507_s3 + $0x10] sm:$0xff]   ;;  %v3630_v24 = vld [vmem:[%s4507_s3 + $0x80] sm:$0xff]   ;;  %3132 = vmatprep.subr.bf16.mxu1 %v3629_v23  ;;  %v3634_v26 = vld [vmem:[%s4507_s3 + $0x88] sm:$0xff]   ;;  %vm1256_vm5 = vcmask 523264   ;;  %vm3802_vm6 = vmmov 0   ;;  %vm1888_vm7 = vcmask 261120  }
   0x8   :  { %122 = vmatprep.subr.bf16.mxu0 %v3618_v5  ;;  %3133 = vmatpush3.bf16.msra.mxu1 %v3630_v24  ;;  %v3631_v27 = vld [vmem:[%s4507_s3 + $0x58] sm:$0xff]   ;;  %v3637_v29 = vld [vmem:[%s4507_s3 + $0xd0] sm:$0xff]   ;;  %v3635_v31 = vld [vmem:[%s4507_s3 + $0x60] sm:$0xff]   ;;  %1257 = vst.msk [vmem:[#allocation3] sm:$0xff] %vm1256_vm5, %v3800_v35  ;;  %vm2816_vm8 = vcmask 1024  }
   0x9   :  { %3134 = vmatprep.subr.bf16.mxu1 %v3633_v25  ;;  %v3632_v28 = vld [vmem:[%s4507_s3 + $0x18] sm:$0xff]   ;;  %v3638_v30 = vld [vmem:[%s4507_s3 + $0x90] sm:$0xff]   ;;  %v3636_v32 = vld [vmem:[%s4507_s3 + $0x20] sm:$0xff]   ;;  %1258 = vst.msk [vmem:[#allocation3 + $0x8] sm:$0xff] %vm1256_vm5, %v3800_v35 }
   0xa   :  { %v3641_v33 = vld [vmem:[%s4507_s3 + $0xd8] sm:$0xff]   ;;  %v3639_v36 = vld [vmem:[%s4507_s3 + $0x68] sm:$0xff]   ;;  %v3645_v38 = vld [vmem:[%s4507_s3 + $0xe0] sm:$0xff]   ;;  %1259 = vst.msk [vmem:[#allocation3 + $0x10] sm:$0xff] %vm1256_vm5, %v3800_v35 }
   0xb   :  { %123 = vmatpush1.bf16.msra.mxu0 %v3620_v7  ;;  %v3642_v34 = vld [vmem:[%s4507_s3 + $0x98] sm:$0xff]   ;;  %v3640_v37 = vld [vmem:[%s4507_s3 + $0x28] sm:$0xff]   ;;  %v3646_v39 = vld [vmem:[%s4507_s3 + $0xa0] sm:$0xff]   ;;  %1260 = vst.msk [vmem:[#allocation3 + $0x18] sm:$0xff] %vm1256_vm5, %v3800_v35 }
   0xc   :  { %2830 = vmatprep.subr.msk.bf16.mxu0 %vm111_vm0, %v2829_v9  ;;  %3135 = vmatpush3.bf16.msra.mxu1 %v3634_v26  ;;  %v3643_v40 = vld [vmem:[%s4507_s3 + $0x70] sm:$0xff]   ;;  %v3649_v42 = vld [vmem:[%s4507_s3 + $0xe8] sm:$0xff]   ;;  %v3647_v44 = vld [vmem:[%s4507_s3 + $0x78] sm:$0xff]   ;;  %1261 = vst.msk [vmem:[#allocation3 + $0x20] sm:$0xff] %vm1256_vm5, %v3800_v35 }
   0xd   :  { %3136 = vmatprep.subr.bf16.mxu1 %v3637_v29  ;;  %v3644_v41 = vld [vmem:[%s4507_s3 + $0x30] sm:$0xff]   ;;  %v3650_v43 = vld [vmem:[%s4507_s3 + $0xa8] sm:$0xff]   ;;  %v3648_v45 = vld [vmem:[%s4507_s3 + $0x38] sm:$0xff]  }
   0xe   :  { %v3653_v46 = vld [vmem:[%s4507_s3 + $0xf0] sm:$0xff]   ;;  %v3651_v47 = vld [vmem:[%s4507_s3 + $0x1c0] sm:$0xff]   ;;  %v3657_v49 = vld [vmem:[%s4507_s3 + $0xf8] sm:$0xff]  }
   0xf   :  { %125 = vmatpush1.bf16.msra.mxu0 %v113_v11  ;;  %v3654_v48 = vld [vmem:[%s4507_s3 + $0xb0] sm:$0xff]   ;;  %v3658_v50 = vld [vmem:[%s4507_s3 + $0xb8] sm:$0xff]   ;;  %v3661_v51 = vld [vmem:[%s4507_s3 + $0x140] sm:$0xff]  }
  0x10   :  { %3160 = vmatprep.subr.bf16.mxu0 %v3623_v13  ;;  %3137 = vmatpush3.bf16.msra.mxu1 %v3638_v30  ;;  %v57_v55 = vld [vmem:[%s4509_s2] sm:$0x3] }
  0x11   :  { %3138 = vmatprep.subr.bf16.mxu1 %v3641_v33  ;;  %v62_v57 = vrot.slane %v57_v55, %v61_v54  ;;  %v66_v58 = vrot.slane %v57_v55, %v65_v56 }
  0x12   :  { %2831 = vmatmul.mubr.msk.bf16.vlgmr.msra.gmra.mrb[0].mxu0 %vm104_vm1, %v48_v15 }
  0x13   :  { %160 = vmatprep.mubr.bf16.mxu0 %v3799_v1  ;;  %3161 = vmatpush3.bf16.msra.mxu0 %v3624_v14 }
  0x14   :  { %3162 = vmatprep.subr.bf16.mxu0 %v3625_v16  ;;  %3139 = vmatpush3.bf16.msra.mxu1 %v3642_v34 }
  0x15   :  { %3140 = vmatprep.subr.bf16.mxu1 %v3645_v38 }
  0x17   :  { %3163 = vmatpush3.bf16.msra.mxu0 %v3626_v19 }
  0x18   :  { %3164 = vmatprep.subr.bf16.mxu0 %v3627_v20  ;;  %3141 = vmatpush3.bf16.msra.mxu1 %v3646_v39 }
  0x19   :  { %3142 = vmatprep.subr.bf16.mxu1 %v3649_v42 }
  0x1a   :  { %2832 = vmatmul.mubr.msk.bf16.gmra.mrb[4].mxu0 %vm104_vm1, %v49_v22 }
  0x1b   :  { %3165 = vmatpush3.bf16.msra.mxu0 %v3628_v21 }
  0x1c   :  { %3166 = vmatprep.subr.bf16.mxu0 %v3631_v27  ;;  %3143 = vmatpush3.bf16.msra.mxu1 %v3650_v43 }
  0x1d   :  { %3144 = vmatprep.subr.bf16.mxu1 %v3653_v46 }
  0x1f   :  { %3167 = vmatpush3.bf16.msra.mxu0 %v3632_v28 }
  0x20   :  { %3168 = vmatprep.subr.bf16.mxu0 %v3635_v31  ;;  %3145 = vmatpush3.bf16.msra.mxu1 %v3654_v48 }
  0x21   :  { %3146 = vmatprep.subr.bf16.mxu1 %v3657_v49 }
  0x23   :  { %3169 = vmatpush3.bf16.msra.mxu0 %v3636_v32 }
  0x24   :  { %3170 = vmatprep.subr.bf16.mxu0 %v3639_v36  ;;  %3147 = vmatpush3.bf16.msra.mxu1 %v3658_v50 }
  0x25   :  { %3188 = vmatprep.subr.bf16.mxu1 %v3661_v51 }
  0x27   :  { %3171 = vmatpush3.bf16.msra.mxu0 %v3640_v37 }
  0x28   :  { %3172 = vmatprep.subr.bf16.mxu0 %v3643_v40  ;;  %v3652_v40 = vld [vmem:[%s4507_s3 + $0x180] sm:$0xff]  }
  0x2b   :  { %3173 = vmatpush3.bf16.msra.mxu0 %v3644_v41 }
  0x2c   :  { %3174 = vmatprep.subr.bf16.mxu0 %v3647_v44 }
  0x2f   :  { %3175 = vmatpush3.bf16.msra.mxu0 %v3648_v45  ;;  %v3655_v45 = vld [vmem:[%s4507_s3 + $0x1c8] sm:$0xff]  }
  0x30   :  { %3216 = vmatprep.subr.bf16.mxu0 %v3651_v47 }
  0xe5   :  { %v152_v59 = vpop.f32.mrb[0].mxu0 }
  0xe6   :  { %v153_v60 = vadd.f32 %v152_v59, %v62_v57  ;;  %v154_v61 = vpop.f32.mrb[1].mxu0 }
  0xe7   :  { %v155_v62 = vadd.f32 %v154_v61, %v66_v58  ;;  %v156_v63 = vpop.f32.mrb[2].mxu0 }
  0xe8   :  { %v171_v0 = vmax.f32 %v153_v60, 0.0  ;;  %v157_v1 = vadd.f32 %v156_v63, %v62_v57  ;;  %v158_v2 = vpop.f32.mrb[3].mxu0  ;;  %v3659_v63 = vld [vmem:[%s4507_s3 + $0x1d0] sm:$0xff]  }
  0xe9   :  { %v172_v3 = vmax.f32 %v155_v62, 0.0  ;;  %v159_v4 = vadd.f32 %v158_v2, %v66_v58 }
  0xea   :  { %v197_v5 = vrot.slane %v171_v0, 4  ;;  %v173_v6 = vmax.f32 %v157_v1, 0.0 }
  0xeb   :  { %v198_v7 = vrot.slane %v172_v3, 4  ;;  %v174_v8 = vmax.f32 %v159_v4, 0.0 }
  0xec   :  { %221 = vst [vmem:[#allocation2] sm:$0xf0] %v197_v5  ;;  %v199_v9 = vrot.slane %v173_v6, 4 }
  0xed   :  { %222 = vst [vmem:[#allocation2 + $0x8] sm:$0xf0] %v198_v7  ;;  %v201_v10 = vrot.slane %v174_v8, 4  ;;  %v162_v11 = vpop.f32.mrb[4].mxu0 }
  0xee   :  { %v4017_v12 = vsel %vm111_vm0, %v197_v5, %v199_v9  ;;  %v163_v13 = vadd.f32 %v162_v11, %v62_v57  ;;  %v164_v14 = vpop.f32.mrb[5].mxu0  ;;  %v3662_v5 = vld [vmem:[%s4507_s3 + $0x100] sm:$0xff]   ;;  %v3665_v11 = vld [vmem:[%s4507_s3 + $0x148] sm:$0xff]  }
  0xef   :  { %v4020_v15 = vsel %vm111_vm0, %v198_v7, %v201_v10  ;;  %v165_v16 = vadd.f32 %v164_v14, %v66_v58  ;;  %v166_v17 = vpop.f32.mrb[6].mxu0 }
  0xf0   :  { %v175_v18 = vmax.f32 %v163_v13, 0.0  ;;  %v167_v19 = vadd.f32 %v166_v17, %v62_v57  ;;  %v168_v20 = vpop.f32.mrb[7].mxu0 }
  0xf1   :  { %v176_v21 = vmax.f32 %v165_v16, 0.0  ;;  %v169_v22 = vadd.f32 %v168_v20, %v66_v58  ;;  %v3656_v58 = vld [vmem:[%s4507_s3 + $0x188] sm:$0xff]   ;;  %v3660_v16 = vld [vmem:[%s4507_s3 + $0x190] sm:$0xff]  }
  0xf2   :  { %v203_v23 = vrot.slane %v175_v18, 4  ;;  %v177_v24 = vmax.f32 %v167_v19, 0.0  ;;  %v3663_v18 = vld [vmem:[%s4507_s3 + $0x1d8] sm:$0xff]  }
  0xf3   :  { %v205_v25 = vrot.slane %v176_v21, 4  ;;  %v178_v26 = vmax.f32 %v169_v22, 0.0  ;;  %v231_v27 = vld [vmem:[#allocation2] sm:$0xff]  ;;  %v3666_v22 = vld [vmem:[%s4507_s3 + $0x108] sm:$0xff]  }
  0xf4   :  { %v275_v28 = vld [vmem:[#allocation2] sm:$0xfc]  ;;  %v4023_v29 = vsel %vm111_vm0, %v199_v9, %v203_v23  ;;  %v207_v30 = vrot.slane %v177_v24, 4  ;;  %v232_v31 = vld [vmem:[#allocation2 + $0x8] sm:$0xff]  ;;  %v239_v32 = vpack.c.bf16 %v4017_v12, %v231_v27 }
  0xf5   :  { %v276_v33 = vld [vmem:[#allocation2 + $0x8] sm:$0xfc]  ;;  %v285_v36 = vpack.c.bf16 %v4017_v12, %v275_v28  ;;  %v4028_v37 = vsel %vm111_vm0, %v201_v10, %v205_v25  ;;  %v209_v38 = vrot.slane %v178_v26, 4  ;;  %v240_v39 = vpack.c.bf16 %v4020_v15, %v232_v31  ;;  %v844_v43 = vld [vmem:[#allocation2] sm:$0xc0]  ;;  %v3673_v31 = vld [vmem:[%s4507_s3 + $0x158] sm:$0xff]  }
  0xf6   :  { %v845_v34 = vld [vmem:[#allocation2 + $0x8] sm:$0xc0]  ;;  %v286_v41 = vpack.c.bf16 %v4020_v15, %v276_v33  ;;  %v4036_v44 = vsel %vm111_vm0, %v203_v23, %v207_v30  ;;  %229 = vst [vmem:[#allocation2 + $0x40] sm:$0xf] %v207_v30  ;;  %v635_v49 = vld [vmem:[#allocation2] sm:$0xf0]  ;;  %v848_v53 = vpack.c.bf16 %v4017_v12, %v844_v43  ;;  %v1056_v7 = vpack.c.bf16 %v4028_v37, %v4020_v15 }
  0xf7   :  { %v636_v42 = vld [vmem:[#allocation2 + $0x8] sm:$0xf0]  ;;  %v849_v46 = vpack.c.bf16 %v4020_v15, %v845_v34  ;;  %v331_v47 = vrot.slane %v285_v36, 1  ;;  %v4044_v50 = vsel %vm111_vm0, %v205_v25, %v209_v38  ;;  %230 = vst [vmem:[#allocation2 + $0x48] sm:$0xf] %v209_v38  ;;  %618 = vmatprep.mubr.bf16.mxu0 %v240_v39  ;;  %v4048_v51 = vpack.c.bf16 %v4036_v44, %v4023_v29  ;;  %v3669_v23 = vld [vmem:[%s4507_s3 + $0x150] sm:$0xff]  }
  0xf8   :  { %v640_v48 = vpack.c.bf16 %v4020_v15, %v636_v42  ;;  %v334_v52 = vrot.slane %v286_v41, 1  ;;  %619 = vmatmul.mubr.bf16.vlgmr.msra.gmra.mrb[8].mxu0 %v239_v32  ;;  %v4053_v54 = vpack.c.bf16 %v4044_v50, %v4028_v37  ;;  %v639_v57 = vpack.c.bf16 %v4017_v12, %v635_v49  ;;  %v3664_v25 = vld [vmem:[%s4507_s3 + $0x198] sm:$0xff]   ;;  %v3667_v27 = vld [vmem:[%s4507_s3 + $0x1e0] sm:$0xff]   ;;  %v3670_v30 = vld [vmem:[%s4507_s3 + $0x110] sm:$0xff]  }
  0xf9   :  { %v893_v55 = vrot.slane %v849_v46, 3  ;;  %3217 = vmatpush3.bf16.msra.mxu0 %v3652_v40  ;;  %v332_v59 = vrot.slane %v4048_v51, 1  ;;  %v890_v60 = vrot.slane %v848_v53, 3  ;;  %v891_v61 = vrot.slane %v4048_v51, 3  ;;  %v3668_v32 = vld [vmem:[%s4507_s3 + $0x1a0] sm:$0xff]   ;;  %v3671_v34 = vld [vmem:[%s4507_s3 + $0x1e8] sm:$0xff]  }
  0xfa   :  { %v684_v56 = vrot.slane %v640_v48, 2  ;;  %v682_v62 = vrot.slane %v4048_v51, 2  ;;  %3218 = vmatprep.subr.bf16.mxu0 %v3655_v45  ;;  %626 = vmatprep.mubr.bf16.mxu0 %v4053_v54  ;;  %v335_v0 = vrot.slane %v4053_v54, 1  ;;  %v894_v1 = vrot.slane %v4053_v54, 3  ;;  %v3674_v36 = vld [vmem:[%s4507_s3 + $0x118] sm:$0xff]   ;;  %v3677_v38 = vld [vmem:[%s4507_s3 + $0x160] sm:$0xff]  }
  0xfb   :  { %v685_v2 = vrot.slane %v4053_v54, 2  ;;  %v681_v3 = vrot.slane %v639_v57, 2  ;;  %v333_v4 = vsel %vm330_vm2, %v331_v47, %v332_v59  ;;  %v4076_v6 = vsel %vm889_vm3, %v890_v60, %v891_v61  ;;  %v3672_v39 = vld [vmem:[%s4507_s3 + $0x1a8] sm:$0xff]   ;;  %v3675_v40 = vld [vmem:[%s4507_s3 + $0x1f0] sm:$0xff]   ;;  %v3678_v41 = vld [vmem:[%s4507_s3 + $0x120] sm:$0xff]  }
  0xfc   :  { %v1055_v8 = vpack.c.bf16 %v4023_v29, %v4017_v12  ;;  %v336_v9 = vsel %vm330_vm2, %v334_v52, %v335_v0  ;;  %v895_v10 = vsel %vm889_vm3, %v893_v55, %v894_v1  ;;  %v3681_v42 = vld [vmem:[%s4507_s3 + $0x168] sm:$0xff]   ;;  %v3676_v43 = vld [vmem:[%s4507_s3 + $0x1b0] sm:$0xff]   ;;  %v3679_v46 = vld [vmem:[%s4507_s3 + $0x1f8] sm:$0xff]  }
  0xfd   :  { %v686_v13 = vsel %vm680_vm4, %v684_v56, %v685_v2  ;;  %v4095_v14 = vsel %vm680_vm4, %v681_v3, %v682_v62  ;;  %3219 = vmatpush3.bf16.msra.mxu0 %v3656_v58  ;;  %473 = vmatprep.mubr.bf16.mxu1 %v336_v9  ;;  %v283_v17 = vld [vmem:[#allocation2 + $0x40] sm:$0x3]  ;;  %v3682_v47 = vld [vmem:[%s4507_s3 + $0x128] sm:$0xff]   ;;  %v3683_v49 = vld [vmem:[%s4507_s3 + $0x170] sm:$0xff]  }
  0xfe   :  { %3220 = vmatprep.subr.bf16.mxu0 %v3659_v63  ;;  %474 = vmatmul.mubr.bf16.vlgmr.msra.gmra.mrb[0].mxu1 %v333_v4  ;;  %v284_v19 = vld [vmem:[#allocation2 + $0x48] sm:$0x3]  ;;  %v289_v20 = vpack.c.bf16 %v283_v17, %v283_v17  ;;  %v3680_v52 = vld [vmem:[%s4507_s3 + $0x1b8] sm:$0xff]   ;;  %v3684_v53 = vld [vmem:[%s4507_s3 + $0x130] sm:$0xff]  }
  0xff   :  { %3189 = vmatpush3.bf16.msra.mxu1 %v3662_v5  ;;  %v290_v21 = vpack.c.bf16 %v284_v19, %v284_v19  ;;  %v847_v45 = vld [vmem:[#allocation2 + $0x48] sm:$0x3f]  ;;  %v3685_v57 = vld [vmem:[%s4507_s3 + $0x178] sm:$0xff]   ;;  %v846_v58 = vld [vmem:[#allocation2 + $0x40] sm:$0x3f] }
 0x100   :  { %627 = vmatmul.mubr.bf16.gmra.mrb[12].mxu0 %v4048_v51  ;;  %3190 = vmatprep.subr.bf16.mxu1 %v3665_v11  ;;  %v337_v26 = vrot.slane %v289_v20, 1  ;;  %v851_v48 = vpack.c.bf16 %v847_v45, %v847_v45  ;;  %v638_v55 = vld [vmem:[#allocation2 + $0x48] sm:$0xf]  ;;  %v3686_v60 = vld [vmem:[%s4507_s3 + $0x138] sm:$0xff]   ;;  %v850_v63 = vpack.c.bf16 %v846_v58, %v846_v58  ;;  %v3687_v3 = vld [vmem:[%s4507_s3 + $0x240] sm:$0xff]  }
 0x101   :  { %3221 = vmatpush3.bf16.msra.mxu0 %v3660_v16  ;;  %1032 = vmatprep.mubr.bf16.mxu0 %v895_v10  ;;  %v339_v24 = vrot.slane %v290_v21, 1  ;;  %v637_v5 = vld [vmem:[#allocation2 + $0x40] sm:$0xf]  ;;  %v3690_v16 = vld [vmem:[%s4507_s3 + $0x208] sm:$0xff]   ;;  %v3692_v54 = vld [vmem:[%s4507_s3 + $0x210] sm:$0xff]  }
 0x102   :  { %3222 = vmatprep.subr.bf16.mxu0 %v3663_v18  ;;  %v338_v33 = vsel %vm330_vm2, %v332_v59, %v337_v26  ;;  %v898_v56 = vrot.slane %v851_v48, 3  ;;  %v642_v59 = vpack.c.bf16 %v638_v55, %v638_v55  ;;  %v896_v9 = vrot.slane %v850_v63, 3  ;;  %v3688_v10 = vld [vmem:[%s4507_s3 + $0x200] sm:$0xff]   ;;  %v3694_v18 = vld [vmem:[%s4507_s3 + $0x218] sm:$0xff]   ;;  %v3697_v15 = vld [vmem:[%s4507_s3 + $0x268] sm:$0xff]  }
 0x103   :  { %v340_v28 = vsel %vm330_vm2, %v335_v0, %v339_v24  ;;  %3191 = vmatpush3.bf16.msra.mxu1 %v3666_v22  ;;  %v3695_v19 = vld [vmem:[%s4507_s3 + $0x260] sm:$0xff]   ;;  %v3698_v37 = vld [vmem:[%s4507_s3 + $0x228] sm:$0xff]   ;;  %v3701_v20 = vld [vmem:[%s4507_s3 + $0x278] sm:$0xff]  }
 0x104   :  { %481 = vmatprep.mubr.bf16.mxu1 %v340_v28  ;;  %3192 = vmatprep.subr.bf16.mxu1 %v3669_v23  ;;  %v899_v0 = vsel %vm889_vm3, %v894_v1, %v898_v56  ;;  %v689_v4 = vrot.slane %v642_v59, 2  ;;  %v641_v1 = vpack.c.bf16 %v637_v5, %v637_v5  ;;  %v3696_v51 = vld [vmem:[%s4507_s3 + $0x220] sm:$0xff]   ;;  %v3702_v21 = vld [vmem:[%s4507_s3 + $0x238] sm:$0xff]   ;;  %v1054_v22 = vld [vmem:[#allocation2 + $0x48] sm:$0xff] }
 0x105   :  { %3223 = vmatpush3.bf16.msra.mxu0 %v3664_v25  ;;  %v1058_v23 = vpack.c.bf16 %v1054_v22, %v4044_v50  ;;  %v1053_v24 = vld [vmem:[#allocation2 + $0x40] sm:$0xff]  ;;  %v3704_v29 = vld [vmem:[%s4510_s5 + $0x28] sm:$0xff]   ;;  %v3706_v50 = vld [vmem:[%s4510_s5 + $0x38] sm:$0xff]  }
 0x106   :  { %3224 = vmatprep.subr.bf16.mxu0 %v3667_v27  ;;  %482 = vmatmul.mubr.bf16.gmra.mrb[4].mxu1 %v338_v33  ;;  %v690_v11 = vsel %vm680_vm4, %v685_v2, %v689_v4  ;;  %v687_v17 = vrot.slane %v641_v1, 2  ;;  %v1057_v25 = vpack.c.bf16 %v1053_v24, %v4036_v44  ;;  %v3703_v12 = vld [vmem:[%s4510_s5 + $0x20] sm:$0xff]   ;;  %v3705_v44 = vld [vmem:[%s4510_s5 + $0x30] sm:$0xff]   ;;  %v3724_v1 = vld [vmem:[%s4511_s7 + $0x8] sm:$0xff]  }
 0x107   :  { %3193 = vmatpush3.bf16.msra.mxu1 %v3670_v30  ;;  %823 = vmatprep.mubr.bf16.mxu1 %v686_v13  ;;  %v897_v13 = vsel %vm889_vm3, %v891_v61, %v896_v9  ;;  %v3693_v61 = vld [vmem:[%s4507_s3 + $0x258] sm:$0xff]  }
 0x108   :  { %3194 = vmatprep.subr.bf16.mxu1 %v3673_v31  ;;  %v688_v2 = vsel %vm680_vm4, %v682_v62, %v687_v17  ;;  %v3699_v62 = vld [vmem:[%s4507_s3 + $0x270] sm:$0xff]  }
 0x109   :  { %3225 = vmatpush3.bf16.msra.mxu0 %v3668_v32 }
 0x10a   :  { %3226 = vmatprep.subr.bf16.mxu0 %v3671_v34 }
 0x10b   :  { %3195 = vmatpush3.bf16.msra.mxu1 %v3674_v36 }
 0x10c   :  { %3196 = vmatprep.subr.bf16.mxu1 %v3677_v38 }
 0x10d   :  { %3227 = vmatpush3.bf16.msra.mxu0 %v3672_v39 }
 0x10e   :  { %3228 = vmatprep.subr.bf16.mxu0 %v3675_v40 }
 0x10f   :  { %3197 = vmatpush3.bf16.msra.mxu1 %v3678_v41 }
 0x110   :  { %3198 = vmatprep.subr.bf16.mxu1 %v3681_v42 }
 0x111   :  { %3229 = vmatpush3.bf16.msra.mxu0 %v3676_v43 }
 0x112   :  { %3230 = vmatprep.subr.bf16.mxu0 %v3679_v46 }
 0x113   :  { %3199 = vmatpush3.bf16.msra.mxu1 %v3682_v47 }
 0x114   :  { %3200 = vmatprep.subr.bf16.mxu1 %v3683_v49 }
 0x115   :  { %3231 = vmatpush3.bf16.msra.mxu0 %v3680_v52 }
 0x116   :  { %3357 = vmatprep.subr.bf16.mxu0 %v3703_v12 }
 0x117   :  { %3201 = vmatpush3.bf16.msra.mxu1 %v3684_v53 }
 0x118   :  { %1033 = vmatmul.mubr.bf16.vlgmr.msra.gmra.mrb[16].mxu0 %v4076_v6  ;;  %3202 = vmatprep.subr.bf16.mxu1 %v3685_v57  ;;  %v3689_v6 = vld [vmem:[%s4507_s3 + $0x248] sm:$0xff]  }
 0x119   :  { %1040 = vmatprep.mubr.bf16.mxu0 %v899_v0  ;;  %3358 = vmatpush3.bf16.msra.mxu0 %v3703_v12 }
 0x11a   :  { %3359 = vmatprep.subr.bf16.mxu0 %v3704_v29 }
 0x11b   :  { %3203 = vmatpush3.bf16.msra.mxu1 %v3686_v60 }
 0x11c   :  { %3244 = vmatprep.subr.bf16.mxu1 %v3687_v3 }
 0x11d   :  { %3360 = vmatpush3.bf16.msra.mxu0 %v3704_v29  ;;  %v3727_v29 = vld [vmem:[%s4511_s7 + $0x20] sm:$0xff]  }
 0x11e   :  { %824 = vmatmul.mubr.bf16.vlgmr.msra.gmra.mrb[8].mxu1 %v4095_v14  ;;  %v3691_v14 = vld [vmem:[%s4507_s3 + $0x250] sm:$0xff]   ;;  %3361 = vmatprep.subr.bf16.mxu0 %v3705_v44 }
 0x11f   :  { %831 = vmatprep.mubr.bf16.mxu1 %v690_v11  ;;  %3245 = vmatpush3.bf16.msra.mxu1 %v3688_v10  ;;  %v3723_v10 = vld [vmem:[%s4511_s7] sm:$0xff]  }
 0x120   :  { %1041 = vmatmul.mubr.bf16.gmra.mrb[20].mxu0 %v897_v13  ;;  %3246 = vmatprep.subr.bf16.mxu1 %v3689_v6 }
 0x121   :  { %3362 = vmatpush3.bf16.msra.mxu0 %v3705_v44 }
 0x122   :  { %3363 = vmatprep.subr.bf16.mxu0 %v3706_v50 }
 0x123   :  { %3247 = vmatpush3.bf16.msra.mxu1 %v3690_v16 }
 0x124   :  { %3248 = vmatprep.subr.bf16.mxu1 %v3691_v14 }
 0x125   :  { %3364 = vmatpush3.bf16.msra.mxu0 %v3706_v50 }
 0x126   :  { %832 = vmatmul.mubr.bf16.gmra.mrb[12].mxu1 %v688_v2 }
 0x127   :  { %3249 = vmatpush3.bf16.msra.mxu1 %v3692_v54  ;;  %1220 = vmatprep.mubr.bf16.mxu1 %v1056_v7  ;;  %v3700_v7 = vld [vmem:[%s4507_s3 + $0x230] sm:$0xff]  }
 0x128   :  { %3250 = vmatprep.subr.bf16.mxu1 %v3693_v61  ;;  %v3725_v61 = vld [vmem:[%s4511_s7 + $0x10] sm:$0xff]  }
 0x12b   :  { %3251 = vmatpush3.bf16.msra.mxu1 %v3694_v18 }
 0x12c   :  { %3252 = vmatprep.subr.bf16.mxu1 %v3695_v19 }
 0x12f   :  { %3253 = vmatpush3.bf16.msra.mxu1 %v3696_v51 }
 0x130   :  { %3254 = vmatprep.subr.bf16.mxu1 %v3697_v15 }
 0x133   :  { %3255 = vmatpush3.bf16.msra.mxu1 %v3698_v37 }
 0x134   :  { %3256 = vmatprep.subr.bf16.mxu1 %v3699_v62 }
 0x137   :  { %3257 = vmatpush3.bf16.msra.mxu1 %v3700_v7 }
 0x138   :  { %3258 = vmatprep.subr.bf16.mxu1 %v3701_v20  ;;  %v3726_v20 = vld [vmem:[%s4511_s7 + $0x18] sm:$0xff]  }
 0x13b   :  { %3259 = vmatpush3.bf16.msra.mxu1 %v3702_v21 }
 0x13c   :  { %3417 = vmatprep.subr.bf16.mxu1 %v3723_v10 }
 0x13e   :  { %1221 = vmatmul.mubr.bf16.vlgmr.msra.gmra.mrb[16].mxu1 %v1055_v8  ;;  %v4267_v8 = vld [vmem:[%s4510_s5] sm:$0xff]  }
 0x13f   :  { %1228 = vmatprep.mubr.bf16.mxu1 %v1058_v23  ;;  %3369 = vmatprep.subr.bf16.mxu0 %v4267_v8 }
 0x140   :  { %3418 = vmatpush3.bf16.msra.mxu1 %v3723_v10 }
 0x141   :  { %3419 = vmatprep.subr.bf16.mxu1 %v3724_v1 }
 0x144   :  { %3420 = vmatpush3.bf16.msra.mxu1 %v3724_v1 }
 0x145   :  { %3421 = vmatprep.subr.bf16.mxu1 %v3725_v61 }
 0x146   :  { %1229 = vmatmul.mubr.bf16.gmra.mrb[20].mxu1 %v1057_v25 }
 0x148   :  { %3422 = vmatpush3.bf16.msra.mxu1 %v3725_v61 }
 0x149   :  { %3423 = vmatprep.subr.bf16.mxu1 %v3726_v20 }
 0x14c   :  { %3424 = vmatpush3.bf16.msra.mxu1 %v3726_v20 }
 0x14d   :  { %3425 = vmatprep.subr.bf16.mxu1 %v3727_v29 }
 0x150   :  { %3426 = vmatpush3.bf16.msra.mxu1 %v3727_v29  ;;  %v3718_v29 = vld [vmem:[%s4510_s5 + $0x78] sm:$0xff]  }
 0x1cb   :  { %v3176_v26 = vpop.f32.mrb[8].mxu0 }
 0x1cc   :  { %v3177_v27 = vpop.f32.mrb[9].mxu0 }
 0x1cd   :  { %v3178_v28 = vadd.f32 %v3177_v27, %v3176_v26  ;;  %v3179_v30 = vpop.f32.mrb[10].mxu0 }
 0x1ce   :  { %v3180_v31 = vpop.f32.mrb[11].mxu0 }
 0x1cf   :  { %v3181_v32 = vadd.f32 %v3180_v31, %v3179_v30 }
 0x1d1   :  { %v3148_v33 = vpop.f32.mrb[0].mxu1 }
 0x1d2   :  { %v3149_v34 = vpop.f32.mrb[1].mxu1 }
 0x1d3   :  { %v3182_v36 = vpop.f32.mrb[12].mxu0  ;;  %v3150_v38 = vadd.f32 %v3149_v34, %v3148_v33  ;;  %v3151_v39 = vpop.f32.mrb[2].mxu1 }
 0x1d4   :  { %v3183_v40 = vpop.f32.mrb[13].mxu0  ;;  %v3152_v41 = vpop.f32.mrb[3].mxu1 }
 0x1d5   :  { %v3184_v42 = vadd.f32 %v3183_v40, %v3182_v36  ;;  %v3185_v43 = vpop.f32.mrb[14].mxu0  ;;  %v621_v45 = vadd.f32 %v3178_v28, %v3150_v38  ;;  %v3153_v46 = vadd.f32 %v3152_v41, %v3151_v39  ;;  %v3728_v28 = vld [vmem:[%s4511_s7 + $0x28] sm:$0xff]   ;;  %v3041_v36 = vld [vmem:[%s4512_s4] ss:$0 sm:$0xff] }
 0x1d6   :  { %v3186_v47 = vpop.f32.mrb[15].mxu0  ;;  %3427 = vmatprep.subr.bf16.mxu1 %v3728_v28 }
 0x1d7   :  { %v3187_v48 = vadd.f32 %v3186_v47, %v3185_v43  ;;  %v624_v49 = vadd.f32 %v3181_v32, %v3153_v46  ;;  %3428 = vmatpush3.bf16.msra.mxu1 %v3728_v28  ;;  %v3720_v28 = vld [vmem:[%s4510_s5 + $0x88] sm:$0xff]  }
 0x1d9   :  { %v3154_v52 = vpop.f32.mrb[4].mxu1 }
 0x1da   :  { %v3155_v53 = vpop.f32.mrb[5].mxu1 }
 0x1db   :  { %v3156_v55 = vadd.f32 %v3155_v53, %v3154_v52  ;;  %v3157_v56 = vpop.f32.mrb[6].mxu1 }
 0x1dc   :  { %v3158_v57 = vpop.f32.mrb[7].mxu1 }
 0x1dd   :  { %v629_v58 = vadd.f32 %v3184_v42, %v3156_v55  ;;  %v3159_v59 = vadd.f32 %v3158_v57, %v3157_v56 }
 0x1df   :  { %v632_v60 = vadd.f32 %v3187_v48, %v3159_v59 }
 0x1eb   :  { %v3232_v63 = vpop.f32.mrb[16].mxu0 }
 0x1ec   :  { %v3233_v0 = vpop.f32.mrb[17].mxu0 }
 0x1ed   :  { %v3234_v3 = vadd.f32 %v3233_v0, %v3232_v63  ;;  %v3235_v4 = vpop.f32.mrb[18].mxu0 }
 0x1ee   :  { %v3236_v5 = vpop.f32.mrb[19].mxu0 }
 0x1ef   :  { %v3237_v9 = vadd.f32 %v3236_v5, %v3235_v4 }
 0x1f1   :  { %v3204_v6 = vpop.f32.mrb[8].mxu1 }
 0x1f2   :  { %v3205_v11 = vpop.f32.mrb[9].mxu1 }
 0x1f3   :  { %v3238_v13 = vpop.f32.mrb[20].mxu0  ;;  %v3206_v16 = vadd.f32 %v3205_v11, %v3204_v6  ;;  %v3207_v14 = vpop.f32.mrb[10].mxu1  ;;  %v3708_v11 = vld [vmem:[%s4510_s5 + $0x8] sm:$0xff]  }
 0x1f4   :  { %v3239_v17 = vpop.f32.mrb[21].mxu0  ;;  %v3208_v54 = vpop.f32.mrb[11].mxu1 }
 0x1f5   :  { %v3240_v2 = vadd.f32 %v3239_v17, %v3238_v13  ;;  %v3241_v18 = vpop.f32.mrb[22].mxu0  ;;  %v840_v19 = vadd.f32 %v3206_v16, %v621_v45  ;;  %v3209_v51 = vadd.f32 %v3208_v54, %v3207_v14  ;;  %v3709_v16 = vld [vmem:[%s4510_s5 + $0x10] sm:$0xff]   ;;  %v3710_v14 = vld [vmem:[%s4510_s5 + $0x18] sm:$0xff]   ;;  %v3711_v17 = vld [vmem:[%s4510_s5 + $0x40] sm:$0xff]  }
 0x1f6   :  { %v3242_v15 = vpop.f32.mrb[23].mxu0 }
 0x1f7   :  { %v3243_v37 = vadd.f32 %v3242_v15, %v3241_v18  ;;  %v841_v62 = vadd.f32 %v3209_v51, %v624_v49  ;;  %v1049_v7 = vadd.f32 %v3234_v3, %v840_v19  ;;  %v3712_v19 = vld [vmem:[%s4510_s5 + $0x48] sm:$0xff]   ;;  %v3713_v15 = vld [vmem:[%s4510_s5 + $0x50] sm:$0xff]  }
 0x1f9   :  { %v3210_v21 = vpop.f32.mrb[12].mxu1  ;;  %v1050_v22 = vadd.f32 %v3237_v9, %v841_v62  ;;  %v3715_v62 = vld [vmem:[%s4510_s5 + $0x60] sm:$0xff]  }
 0x1fa   :  { %v3211_v23 = vpop.f32.mrb[13].mxu1 }
 0x1fb   :  { %v3212_v24 = vadd.f32 %v3211_v23, %v3210_v21  ;;  %v3213_v25 = vpop.f32.mrb[14].mxu1 }
 0x1fc   :  { %v3214_v12 = vpop.f32.mrb[15].mxu1 }
 0x1fd   :  { %v842_v44 = vadd.f32 %v3212_v24, %v629_v58  ;;  %v3215_v50 = vadd.f32 %v3214_v12, %v3213_v25  ;;  %v3716_v24 = vld [vmem:[%s4510_s5 + $0x68] sm:$0xff]   ;;  %v3717_v12 = vld [vmem:[%s4510_s5 + $0x70] sm:$0xff]  }
 0x1ff   :  { %v843_v26 = vadd.f32 %v3215_v50, %v632_v60  ;;  %v1051_v27 = vadd.f32 %v3240_v2, %v842_v44  ;;  %v3719_v44 = vld [vmem:[%s4510_s5 + $0x80] sm:$0xff]  }
 0x201   :  { %v1052_v30 = vadd.f32 %v3243_v37, %v843_v26  ;;  %v3714_v37 = vld [vmem:[%s4510_s5 + $0x58] sm:$0xff]  }
 0x211   :  { %v3260_v31 = vpop.f32.mrb[16].mxu1 }
 0x212   :  { %v3261_v32 = vpop.f32.mrb[17].mxu1 }
 0x213   :  { %v3262_v33 = vadd.f32 %v3261_v32, %v3260_v31  ;;  %v3263_v34 = vpop.f32.mrb[18].mxu1  ;;  %v3721_v31 = vld [vmem:[%s4510_s5 + $0x90] sm:$0xff]   ;;  %v3722_v32 = vld [vmem:[%s4510_s5 + $0x98] sm:$0xff]  }
 0x214   :  { %v3264_v38 = vpop.f32.mrb[19].mxu1 }
 0x215   :  { %v1237_v39 = vadd.f32 %v3262_v33, %v1049_v7  ;;  %v3265_v40 = vadd.f32 %v3264_v38, %v3263_v34  ;;  %v3730_v38 = vld [vmem:[%s4511_s7 + $0x38] sm:$0xff]  }
 0x217   :  { %v1248_v41 = vadd.f32 %v3041_v36, %v1237_v39  ;;  %v1238_v42 = vadd.f32 %v3265_v40, %v1050_v22  ;;  %v3801_v39 = vmov 0.0|0.0   ;;  %v1884_v40 = vld [vmem:[%s4513_s9] sm:$0xff] }
 0x219   :  { %v1252_v43 = vmax.f32 %v1248_v41, 0.0  ;;  %v1249_v45 = vadd.f32 %v3041_v36, %v1238_v42  ;;  %v3266_v46 = vpop.f32.mrb[20].mxu1  ;;  %v1885_v41 = vld [vmem:[%s4513_s9 + $0x8] sm:$0xff] }
 0x21a   :  { %v3267_v47 = vpop.f32.mrb[21].mxu1  ;;  %v4369_v42 = vpack.c.bf16 %v1885_v41, %v1884_v40 }
 0x21b   :  { %1262 = vst.msk [vmem:[#allocation3 + $0x4] sm:$0xff] %vm1256_vm5, %v1252_v43  ;;  %v1253_v48 = vmax.f32 %v1249_v45, 0.0  ;;  %v3268_v49 = vadd.f32 %v3267_v47, %v3266_v46  ;;  %v3269_v52 = vpop.f32.mrb[22].mxu1  ;;  %v1886_v43 = vld [vmem:[%s4513_s9 + $0x10] sm:$0xff]  ;;  %v1887_v45 = vld [vmem:[%s4513_s9 + $0x18] sm:$0xff] }
 0x21c   :  { %v3270_v53 = vpop.f32.mrb[23].mxu1  ;;  %v4379_v46 = vpack.c.bf16 %v1887_v45, %v1886_v43  ;;  %v3104_v47 = vld [vmem:[%s4514_s6] ss:$0 sm:$0xff] }
 0x21d   :  { %1263 = vst.msk [vmem:[#allocation3 + $0xc] sm:$0xff] %vm1256_vm5, %v1253_v48  ;;  %v1239_v55 = vadd.f32 %v3268_v49, %v1051_v27  ;;  %v3271_v56 = vadd.f32 %v3270_v53, %v3269_v52 }
 0x21f   :  { %v1250_v57 = vadd.f32 %v3041_v36, %v1239_v55  ;;  %v1240_v58 = vadd.f32 %v3271_v56, %v1052_v30 }
 0x221   :  { %v1254_v59 = vmax.f32 %v1250_v57, 0.0  ;;  %v1251_v60 = vadd.f32 %v3041_v36, %v1240_v58  ;;  %v3729_v36 = vld [vmem:[%s4511_s7 + $0x30] sm:$0xff]  }
 0x222   :  { %v1280_v0 = vld [vmem:[#allocation3 + $0x2] sm:$0xff]  ;;  %3429 = vmatprep.subr.bf16.mxu1 %v3729_v36 }
 0x223   :  { %1264 = vst.msk [vmem:[#allocation3 + $0x14] sm:$0xff] %vm1256_vm5, %v1254_v59  ;;  %v1255_v63 = vmax.f32 %v1251_v60, 0.0  ;;  %v1266_v1 = vld [vmem:[#allocation3] sm:$0xff]  ;;  %3430 = vmatpush3.bf16.msra.mxu1 %v3729_v36 }
 0x224   :  { %v1281_v3 = vld [vmem:[#allocation3 + $0xa] sm:$0xff]  ;;  %3431 = vmatprep.subr.bf16.mxu1 %v3730_v38 }
 0x225   :  { %1265 = vst.msk [vmem:[#allocation3 + $0x1c] sm:$0xff] %vm1256_vm5, %v1255_v63  ;;  %v1284_v4 = vpack.c.bf16 %v1281_v3, %v1280_v0  ;;  %v4296_v5 = vld [vmem:[#allocation3 + $0x8] sm:$0xff] }
 0x226   :  { %v1270_v13 = vpack.c.bf16 %v4296_v5, %v1266_v1  ;;  %v1454_v54 = vld [vmem:[#allocation3 + $0xc] sm:$0xff]  ;;  %v1453_v18 = vld [vmem:[#allocation3 + $0x4] sm:$0xff] }
 0x227   :  { %3365 = vmatprep.mubr.msk.bf16.mxu0 %vm1256_vm5, %v1284_v4  ;;  %v1457_v51 = vpack.c.bf16 %v1454_v54, %v1453_v18  ;;  %v1551_v23 = vld [vmem:[#allocation3 + $0x6] sm:$0xff]  ;;  %3432 = vmatpush3.bf16.msra.mxu1 %v3730_v38 }
 0x228   :  { %3536 = vmatprep.subr.bf16.mxu1 %v3801_v39 }
 0x22a   :  { %v1282_v9 = vld [vmem:[#allocation3 + $0x12] sm:$0xff] }
 0x22b   :  { %v1268_v61 = vld [vmem:[#allocation3 + $0x10] sm:$0xff] }
 0x22c   :  { %v1283_v10 = vld [vmem:[#allocation3 + $0x1a] sm:$0xff]  ;;  %v1552_v20 = vld [vmem:[#allocation3 + $0xe] sm:$0xff]  ;;  %v1653_v30 = vpack.c.bf16 %v1268_v61, %v4296_v5 }
 0x22d   :  { %v1285_v6 = vpack.c.bf16 %v1283_v10, %v1282_v9  ;;  %v1456_v7 = vld [vmem:[#allocation3 + $0x1c] sm:$0xff]  ;;  %v1455_v21 = vld [vmem:[#allocation3 + $0x14] sm:$0xff]  ;;  %v1555_v25 = vpack.c.bf16 %v1552_v20, %v1551_v23  ;;  %v3105_v5 = vld [vmem:[%s4515_s8] ss:$0 sm:$0xff]  ;;  %s3804_s8 = smov 32  }
 0x22e   :  { %v1458_v22 = vpack.c.bf16 %v1456_v7, %v1455_v21  ;;  %v1553_v50 = vld [vmem:[#allocation3 + $0x16] sm:$0xff]  ;;  %v1554_v26 = vld [vmem:[#allocation3 + $0x1e] sm:$0xff] }
 0x22f   :  { %3366 = vmatmul.mubr.msk.bf16.vlgmr.msra.gmra.mrb[24].mxu0 %vm1256_vm5, %v1285_v6  ;;  %v1556_v27 = vpack.c.bf16 %v1554_v26, %v1553_v50  ;;  %v1652_v33 = vld [vmem:[#allocation3 + $0x20] sm:$0xff] }
 0x230   :  { %3370 = vmatpush3.bf16.msra.mxu0 %v4267_v8  ;;  %3377 = vmatprep.mubr.msk.bf16.mxu0 %vm1256_vm5, %v1270_v13  ;;  %v1269_v8 = vld [vmem:[#allocation3 + $0x18] sm:$0xff] }
 0x231   :  { %3371 = vmatprep.subr.bf16.mxu0 %v3708_v11  ;;  %v1271_v2 = vpack.c.bf16 %v1269_v8, %v1268_v61  ;;  %v1654_v34 = vpack.c.bf16 %v1652_v33, %v1269_v8 }
 0x234   :  { %3372 = vmatpush3.bf16.msra.mxu0 %v3708_v11 }
 0x235   :  { %3373 = vmatprep.subr.bf16.mxu0 %v3709_v16 }
 0x238   :  { %3374 = vmatpush3.bf16.msra.mxu0 %v3709_v16 }
 0x239   :  { %3375 = vmatprep.subr.bf16.mxu0 %v3710_v14 }
 0x23c   :  { %3376 = vmatpush3.bf16.msra.mxu0 %v3710_v14 }
 0x23d   :  { %3381 = vmatprep.subr.bf16.mxu0 %v3711_v17 }
 0x23f   :  { %3378 = vmatmul.mubr.msk.bf16.vlgmr.msra.gmra.mrb[24].mxu0 %vm1256_vm5, %v1271_v2 }
 0x240   :  { %3382 = vmatpush3.bf16.msra.mxu0 %v3711_v17  ;;  %3389 = vmatprep.mubr.msk.bf16.mxu0 %vm1256_vm5, %v1457_v51 }
 0x241   :  { %3383 = vmatprep.subr.bf16.mxu0 %v3712_v19 }
 0x244   :  { %3384 = vmatpush3.bf16.msra.mxu0 %v3712_v19 }
 0x245   :  { %3385 = vmatprep.subr.bf16.mxu0 %v3713_v15 }
 0x248   :  { %3386 = vmatpush3.bf16.msra.mxu0 %v3713_v15 }
 0x249   :  { %3387 = vmatprep.subr.bf16.mxu0 %v3714_v37 }
 0x24c   :  { %3388 = vmatpush3.bf16.msra.mxu0 %v3714_v37 }
 0x24d   :  { %3393 = vmatprep.subr.bf16.mxu0 %v3715_v62 }
 0x24f   :  { %3390 = vmatmul.mubr.msk.bf16.vlgmr.msra.gmra.mrb[24].mxu0 %vm1256_vm5, %v1458_v22 }
 0x250   :  { %3394 = vmatpush3.bf16.msra.mxu0 %v3715_v62  ;;  %3401 = vmatprep.mubr.msk.bf16.mxu0 %vm1256_vm5, %v1555_v25 }
 0x251   :  { %3395 = vmatprep.subr.bf16.mxu0 %v3716_v24 }
 0x254   :  { %3396 = vmatpush3.bf16.msra.mxu0 %v3716_v24 }
 0x255   :  { %3397 = vmatprep.subr.bf16.mxu0 %v3717_v12 }
 0x258   :  { %3398 = vmatpush3.bf16.msra.mxu0 %v3717_v12 }
 0x259   :  { %3399 = vmatprep.subr.bf16.mxu0 %v3718_v29 }
 0x25c   :  { %3400 = vmatpush3.bf16.msra.mxu0 %v3718_v29 }
 0x25d   :  { %3405 = vmatprep.subr.bf16.mxu0 %v3719_v44 }
 0x25f   :  { %3402 = vmatmul.mubr.msk.bf16.vlgmr.msra.gmra.mrb[24].mxu0 %vm1256_vm5, %v1556_v27 }
 0x260   :  { %3406 = vmatpush3.bf16.msra.mxu0 %v3719_v44  ;;  %3413 = vmatprep.mubr.msk.bf16.mxu0 %vm1256_vm5, %v1653_v30 }
 0x261   :  { %3407 = vmatprep.subr.bf16.mxu0 %v3720_v28 }
 0x264   :  { %3408 = vmatpush3.bf16.msra.mxu0 %v3720_v28 }
 0x265   :  { %3409 = vmatprep.subr.bf16.mxu0 %v3721_v31 }
 0x268   :  { %3410 = vmatpush3.bf16.msra.mxu0 %v3721_v31 }
 0x269   :  { %3411 = vmatprep.subr.bf16.mxu0 %v3722_v32 }
 0x26c   :  { %3412 = vmatpush3.bf16.msra.mxu0 %v3722_v32 }
 0x26d   :  { %3560 = vmatprep.subr.bf16.mxu0 %v3801_v39 }
 0x26f   :  { %3414 = vmatmul.mubr.msk.bf16.vlgmr.msra.gmra.mrb[24].mxu0 %vm1256_vm5, %v1654_v34 }
 0x270   :  { %3562 = vmatpush3.bf16.msra.mxu0 %v4369_v42  ;;  %3489 = vmatprep.mubr.msk.f32.mxu0 %vm3802_vm6, %v3800_v35 }
 0x271   :  { %3563 = vmatprep.subr.bf16.mxu0 %v3801_v39 }
 0x274   :  { %3565 = vmatpush3.bf16.msra.mxu0 %v4379_v46 }
 0x275   :  { %3572 = vmatprep.subr.bf16.mxu0 %v3801_v39 }
 0x342   :  { %v3415_v48 = vpop.f32.mrb[24].mxu0 }
 0x343   :  { %v1756_v49 = vadd.f32 %v3415_v48, %v3104_v47  ;;  %v1728_v52 = vpop.f32.mrb[25].mxu0 }
 0x344   :  { %v1754_v53 = vadd.f32 %v3104_v47, %v1728_v52  ;;  %v3416_v55 = vpop.f32.mrb[26].mxu0 }
 0x345   :  { %v1757_v56 = vadd.f32 %v3416_v55, %v3104_v47  ;;  %v1731_v57 = vpop.f32.mrb[27].mxu0  ;;  %v1760_v59 = vmax.f32 %v1756_v49, 0.0 }
 0x346   :  { %v1755_v58 = vadd.f32 %v3104_v47, %v1731_v57  ;;  %v1758_v63 = vmax.f32 %v1754_v53, 0.0 }
 0x347   :  { %v1761_v60 = vmax.f32 %v1757_v56, 0.0 }
 0x348   :  { %v1759_v0 = vmax.f32 %v1755_v58, 0.0 }
 0x349   :  { %v1763_v3 = vpack.c.bf16 %v1761_v60, %v1760_v59 }
 0x34a   :  { %v1762_v4 = vpack.c.bf16 %v1759_v0, %v1758_v63 }
 0x34c   :  { %3433 = vmatprep.mubr.bf16.mxu1 %v1762_v4 }
 0x34d   :  { %3434 = vmatmul.mubr.bf16.vlgmr.msra.gmra.mrb[24].mxu1 %v1763_v3 }
 0x34e   :  { %3538 = vmatpush3.bf16.msra.mxu1 %v4369_v42  ;;  %3445 = vmatprep.mubr.msk.f32.mxu1 %vm3802_vm6, %v3800_v35 }
 0x34f   :  { %3539 = vmatprep.subr.bf16.mxu1 %v3801_v39 }
 0x352   :  { %3541 = vmatpush3.bf16.msra.mxu1 %v4379_v46 }
 0x353   :  { %3542 = vmatprep.subr.bf16.mxu1 %v3801_v39 }
 0x355   :  { %3446 = vmatmul.mubr.f32.vlgmr.msra.gmra.mrb[28].mxu1 %v3800_v35 }
 0x356   :  { %3544 = vmatpush3.bf16.msra.mxu1 %v4369_v42  ;;  %3456 = vmatprep.mubr.msk.f32.mxu1 %vm3802_vm6, %v3800_v35 }
 0x357   :  { %3545 = vmatprep.subr.bf16.mxu1 %v3801_v39 }
 0x35a   :  { %3547 = vmatpush3.bf16.msra.mxu1 %v4379_v46 }
 0x35b   :  { %3548 = vmatprep.subr.bf16.mxu1 %v3801_v39 }
 0x420   :  { %v3435_v9 = vpop.f32.mrb[24].mxu1 }
 0x421   :  { %v4404_v10 = vadd.f32 %v3435_v9, %v3105_v5  ;;  %v1869_v6 = vpop.f32.mrb[25].mxu1 }
 0x422   :  { %v3436_v1 = vpop.f32.mrb[26].mxu1  ;;  %v1870_v14 = vadd.f32 %v3105_v5, %v1869_v6 }
 0x423   :  { %v4406_v11 = vadd.f32 %v3436_v1, %v3105_v5  ;;  %v1872_v13 = vpop.f32.mrb[27].mxu1 }
 0x424   :  { %v4408_v16 = vadd.f32 %v3105_v5, %v1872_v13 }
 0x428   :  { %v1958_v17 = vpop.f32.mrb[28].mxu1 }
 0x429   :  { %v1962_v8 = vadd.f32 %v1958_v17, %v1870_v14  ;;  %v3447_v54 = vpop.f32.mrb[29].mxu1 }
 0x42b   :  { %3731 = vtanh.f32 %v1962_v8  ;;  %v3114_v2 = vmul.f32 -1.442695, %v1962_v8 }
 0x42d   :  { %3733 = vpow2.f32 %v3114_v2 }
 0x435   :  { %v3732_v61 = vpop.eup %3731 }
 0x436   :  { %1972 = vrot.lane.b32.xlu0 %v3732_v61, %s3803_s20 }
 0x437   :  { %v3734_v18 = vpop.eup %3733 }
 0x438   :  { %v1966_v19 = vadd.f32 1.0, %v3734_v18 }
 0x43a   :  { %3735 = vrcp.f32 %v1966_v19 }
 0x444   :  { %v3736_v51 = vpop.eup %3735 }
 0x445   :  { %v1970_v62 = vmul.f32 0.0, %v3736_v51 }
 0x4a8   :  { %v1973_v15 = vpop.permute.xlu0 %1972 }
 0x4a9   :  { %v1975_v37 = vmul.f32 %v3736_v51, %v1973_v15 }
 0x4ab   :  { %1977 = vrot.lane.b32.xlu0 %v1975_v37, %s3804_s8 }
 0x51d   :  { %v1978_v7 = vpop.permute.xlu0 %1977 }
 0x51e   :  { %v1980_v20 = vadd.f32 %v1978_v7, %v1970_v62 }
 0x520   :  { %3737 = vtanh.f32 %v1980_v20  ;;  %v2074_v33 = vrot.slane %v1980_v20, 4 }
 0x52a   :  { %v3738_v21 = vpop.eup %3737 }
 0x52b   :  { %1983 = vrot.lane.b32.xlu1 %v3738_v21, %s3803_s20 }
 0x59d   :  { %v1984_v22 = vpop.permute.xlu1 %1983 }
 0x59e   :  { %v1986_v23 = vmul.f32 %v3736_v51, %v1984_v22 }
 0x5a0   :  { %1988 = vrot.lane.b32.xlu1 %v1986_v23, %s3804_s8 }
 0x612   :  { %v1989_v24 = vpop.permute.xlu1 %1988 }
 0x613   :  { %3457 = vmatmul.mubr.msk.f32.vlgmr.msra.gmra.mrb[30].mxu1 %vm1888_vm7, %v1989_v24 }
 0x614   :  { %3550 = vmatpush3.bf16.msra.mxu1 %v4369_v42  ;;  %3467 = vmatprep.mubr.msk.f32.mxu1 %vm3802_vm6, %v3800_v35 }
 0x615   :  { %3551 = vmatprep.subr.bf16.mxu1 %v3801_v39 }
 0x618   :  { %3553 = vmatpush3.bf16.msra.mxu1 %v4379_v46 }
 0x619   :  { %3554 = vmatprep.subr.bf16.mxu1 %v3801_v39 }
 0x6e6   :  { %v2058_v25 = vpop.f32.mrb[30].mxu1 }
 0x6e7   :  { %v2063_v12 = vrot.slane %v2058_v25, 4  ;;  %v3458_v29 = vpop.f32.mrb[31].mxu1 }
 0x6e9   :  { %v2065_v44 = vadd.f32 %v2063_v12, %v1870_v14 }
 0x6eb   :  { %3739 = vtanh.f32 %v2065_v44  ;;  %v3116_v26 = vmul.f32 -1.442695, %v2065_v44 }
 0x6ed   :  { %3741 = vpow2.f32 %v3116_v26 }
 0x6f5   :  { %v3740_v50 = vpop.eup %3739 }
 0x6f6   :  { %2078 = vrot.lane.b32.xlu0 %v3740_v50, %s3803_s20 }
 0x6f7   :  { %v3742_v27 = vpop.eup %3741 }
 0x6f8   :  { %v2069_v28 = vadd.f32 1.0, %v3742_v27 }
 0x6fa   :  { %3743 = vrcp.f32 %v2069_v28 }
 0x704   :  { %v3744_v30 = vpop.eup %3743 }
 0x705   :  { %v2076_v34 = vmul.f32 %v3744_v30, %v2074_v33 }
 0x768   :  { %v2079_v31 = vpop.permute.xlu0 %2078 }
 0x769   :  { %v2081_v32 = vmul.f32 %v3744_v30, %v2079_v31 }
 0x76b   :  { %2083 = vrot.lane.b32.xlu1 %v2081_v32, %s3804_s8 }
 0x7dd   :  { %v2084_v36 = vpop.permute.xlu1 %2083 }
 0x7de   :  { %v2086_v38 = vadd.f32 %v2084_v36, %v2076_v34 }
 0x7e0   :  { %3745 = vtanh.f32 %v2086_v38  ;;  %v2178_v63 = vrot.slane %v2086_v38, 4 }
 0x7ea   :  { %v3746_v40 = vpop.eup %3745 }
 0x7eb   :  { %2089 = vrot.lane.b32.xlu0 %v3746_v40, %s3803_s20 }
 0x85d   :  { %v2090_v41 = vpop.permute.xlu0 %2089 }
 0x85e   :  { %v2092_v43 = vmul.f32 %v3744_v30, %v2090_v41 }
 0x860   :  { %v2094_v45 = vrot.slane %v2092_v43, 4 }
 0x862   :  { %2095 = vrot.lane.b32.xlu1 %v2094_v45, %s3804_s8 }
 0x8d4   :  { %v2096_v47 = vpop.permute.xlu1 %2095 }
 0x8d5   :  { %3468 = vmatmul.mubr.msk.f32.vlgmr.msra.gmra.mrb[32].mxu1 %vm1888_vm7, %v2096_v47 }
 0x8d6   :  { %3556 = vmatpush3.bf16.msra.mxu1 %v4369_v42  ;;  %3478 = vmatprep.mubr.msk.f32.mxu1 %vm3802_vm6, %v3800_v35 }
 0x8d7   :  { %3557 = vmatprep.subr.bf16.mxu1 %v3801_v39 }
 0x8da   :  { %3559 = vmatpush3.bf16.msra.mxu1 %v4379_v46 }
 0x8db   :  { %3566 = vmatprep.subr.bf16.mxu1 %v3801_v39 }
 0x9a8   :  { %v2165_v48 = vpop.f32.mrb[32].mxu1 }
 0x9a9   :  { %v2169_v49 = vadd.f32 %v2165_v48, %v4408_v16  ;;  %v3469_v52 = vpop.f32.mrb[33].mxu1 }
 0x9ab   :  { %3747 = vtanh.f32 %v2169_v49  ;;  %v3118_v55 = vmul.f32 -1.442695, %v2169_v49 }
 0x9ad   :  { %3749 = vpow2.f32 %v3118_v55 }
 0x9b5   :  { %v3748_v53 = vpop.eup %3747 }
 0x9b6   :  { %2182 = vrot.lane.b32.xlu0 %v3748_v53, %s3803_s20 }
 0x9b7   :  { %v3750_v56 = vpop.eup %3749 }
 0x9b8   :  { %v2173_v57 = vadd.f32 1.0, %v3750_v56 }
 0x9ba   :  { %3751 = vrcp.f32 %v2173_v57 }
 0x9c4   :  { %v3752_v58 = vpop.eup %3751 }
 0x9c5   :  { %v2180_v0 = vmul.f32 %v3752_v58, %v2178_v63 }
 0xa28   :  { %v2183_v59 = vpop.permute.xlu0 %2182 }
 0xa29   :  { %v2185_v60 = vmul.f32 %v3752_v58, %v2183_v59 }
 0xa2b   :  { %2187 = vrot.lane.b32.xlu1 %v2185_v60, %s3804_s8 }
 0xa9d   :  { %v2188_v3 = vpop.permute.xlu1 %2187 }
 0xa9e   :  { %v2190_v4 = vadd.f32 %v2188_v3, %v2180_v0 }
 0xaa0   :  { %3753 = vtanh.f32 %v2190_v4  ;;  %v2284_v37 = vrot.slane %v2190_v4, 4 }
 0xaaa   :  { %v3754_v5 = vpop.eup %3753 }
 0xaab   :  { %2193 = vrot.lane.b32.xlu0 %v3754_v5, %s3803_s20 }
 0xb1d   :  { %v2194_v9 = vpop.permute.xlu0 %2193 }
 0xb1e   :  { %v2196_v6 = vmul.f32 %v3752_v58, %v2194_v9 }
 0xb20   :  { %2198 = vrot.lane.b32.xlu1 %v2196_v6, %s3804_s8 }
 0xb92   :  { %v2199_v1 = vpop.permute.xlu1 %2198 }
 0xb93   :  { %3479 = vmatmul.mubr.msk.f32.vlgmr.msra.gmra.mrb[34].mxu1 %vm1888_vm7, %v2199_v1 }
 0xb94   :  { %3568 = vmatpush3.bf16.msra.mxu1 %v4369_v42  ;;  %3500 = vmatprep.mubr.msk.f32.mxu1 %vm3802_vm6, %v3800_v35 }
 0xb95   :  { %3569 = vmatprep.subr.bf16.mxu1 %v3801_v39 }
 0xb98   :  { %3571 = vmatpush3.bf16.msra.mxu1 %v4379_v46 }
 0xb99   :  { %3578 = vmatprep.subr.bf16.mxu1 %v3801_v39 }
 0xc66   :  { %v2268_v13 = vpop.f32.mrb[34].mxu1 }
 0xc67   :  { %v2273_v14 = vrot.slane %v2268_v13, 4  ;;  %v3480_v17 = vpop.f32.mrb[35].mxu1 }
 0xc69   :  { %v2275_v8 = vadd.f32 %v2273_v14, %v4408_v16 }
 0xc6b   :  { %3755 = vtanh.f32 %v2275_v8  ;;  %v3120_v61 = vmul.f32 -1.442695, %v2275_v8 }
 0xc6d   :  { %3757 = vpow2.f32 %v3120_v61 }
 0xc75   :  { %v3756_v54 = vpop.eup %3755 }
 0xc76   :  { %2288 = vrot.lane.b32.xlu0 %v3756_v54, %s3803_s20 }
 0xc77   :  { %v3758_v2 = vpop.eup %3757 }
 0xc78   :  { %v2279_v18 = vadd.f32 1.0, %v3758_v2 }
 0xc7a   :  { %3759 = vrcp.f32 %v2279_v18 }
 0xc84   :  { %v3760_v19 = vpop.eup %3759 }
 0xc85   :  { %v2286_v62 = vmul.f32 %v3760_v19, %v2284_v37 }
 0xce8   :  { %v2289_v51 = vpop.permute.xlu0 %2288 }
 0xce9   :  { %v2291_v15 = vmul.f32 %v3760_v19, %v2289_v51 }
 0xceb   :  { %2293 = vrot.lane.b32.xlu1 %v2291_v15, %s3804_s8 }
 0xd5d   :  { %v2294_v7 = vpop.permute.xlu1 %2293 }
 0xd5e   :  { %v2296_v20 = vadd.f32 %v2294_v7, %v2286_v62 }
 0xd60   :  { %3761 = vtanh.f32 %v2296_v20  ;;  %v2388_v32 = vrot.slane %v2296_v20, 4 }
 0xd6a   :  { %v3762_v16 = vpop.eup %3761 }
 0xd6b   :  { %2299 = vrot.lane.b32.xlu0 %v3762_v16, %s3803_s20 }
 0xddd   :  { %v2300_v21 = vpop.permute.xlu0 %2299 }
 0xdde   :  { %v2302_v22 = vmul.f32 %v3760_v19, %v2300_v21 }
 0xde0   :  { %v2304_v23 = vrot.slane %v2302_v22, 4 }
 0xde2   :  { %2305 = vrot.lane.b32.xlu1 %v2304_v23, %s3804_s8 }
 0xe54   :  { %v2306_v24 = vpop.permute.xlu1 %2305 }
 0xe55   :  { %3490 = vmatmul.mubr.msk.f32.vlgmr.msra.gmra.mrb[28].mxu0 %vm1888_vm7, %v2306_v24 }
 0xe56   :  { %3574 = vmatpush3.bf16.msra.mxu0 %v4369_v42  ;;  %3511 = vmatprep.mubr.msk.f32.mxu0 %vm3802_vm6, %v3800_v35 }
 0xe57   :  { %3575 = vmatprep.subr.bf16.mxu0 %v3801_v39 }
 0xe5a   :  { %3577 = vmatpush3.bf16.msra.mxu0 %v4379_v46 }
 0xe5b   :  { %3584 = vmatprep.subr.bf16.mxu0 %v3801_v39 }
 0xf28   :  { %v2375_v25 = vpop.f32.mrb[28].mxu0 }
 0xf29   :  { %v2379_v12 = vadd.f32 %v2375_v25, %v4404_v10  ;;  %v3491_v29 = vpop.f32.mrb[29].mxu0 }
 0xf2b   :  { %3763 = vtanh.f32 %v2379_v12  ;;  %v3122_v50 = vmul.f32 -1.442695, %v2379_v12 }
 0xf2d   :  { %3765 = vpow2.f32 %v3122_v50 }
 0xf35   :  { %v3764_v44 = vpop.eup %3763 }
 0xf36   :  { %2392 = vrot.lane.b32.xlu0 %v3764_v44, %s3803_s20 }
 0xf37   :  { %v3766_v26 = vpop.eup %3765 }
 0xf38   :  { %v2383_v27 = vadd.f32 1.0, %v3766_v26 }
 0xf3a   :  { %3767 = vrcp.f32 %v2383_v27 }
 0xf44   :  { %v3768_v28 = vpop.eup %3767 }
 0xf45   :  { %v2390_v33 = vmul.f32 %v3768_v28, %v2388_v32  ;;  %v2725_v32 = vld [vmem:[%s4516_s10 + $0x10] sm:$0xff] }
 0xfa8   :  { %v2393_v30 = vpop.permute.xlu0 %2392 }
 0xfa9   :  { %v2395_v31 = vmul.f32 %v3768_v28, %v2393_v30 }
 0xfab   :  { %2397 = vrot.lane.b32.xlu1 %v2395_v31, %s3804_s8  ;;  %v2724_v31 = vld [vmem:[%s4516_s10 + $0x8] sm:$0xff] }
0x101d   :  { %v2398_v34 = vpop.permute.xlu1 %2397 }
0x101e   :  { %v2400_v36 = vadd.f32 %v2398_v34, %v2390_v33  ;;  %v2726_v34 = vld [vmem:[%s4516_s10 + $0x18] sm:$0xff] }
0x1020   :  { %3769 = vtanh.f32 %v2400_v36 }
0x102a   :  { %v3770_v38 = vpop.eup %3769 }
0x102b   :  { %2403 = vrot.lane.b32.xlu0 %v3770_v38, %s3803_s20 }
0x109d   :  { %v2404_v40 = vpop.permute.xlu0 %2403 }
0x109e   :  { %v2406_v41 = vmul.f32 %v3768_v28, %v2404_v40  ;;  %v17_v40 = vstv %s4517_s11 }
0x109f   :  { %18 = vst [vmem:[#allocation4] sm:$0x1] %v17_v40 }
0x10a0   :  { %2408 = vrot.lane.b32.xlu1 %v2406_v41, %s3804_s8 }
0x1112   :  { %v2409_v43 = vpop.permute.xlu1 %2408 }
0x1113   :  { %3501 = vmatmul.mubr.msk.f32.vlgmr.msra.gmra.mrb[36].mxu1 %vm1888_vm7, %v2409_v43 }
0x1114   :  { %3580 = vmatpush3.bf16.msra.mxu1 %v4369_v42  ;;  %3522 = vmatprep.mubr.msk.f32.mxu1 %vm3802_vm6, %v3800_v35 }
0x1115   :  { %3581 = vmatprep.subr.bf16.mxu1 %v3801_v39 }
0x1118   :  { %3583 = vmatpush3.bf16.msra.mxu1 %v4379_v46  ;;  %v2494_v46 = vrot.slane %v2400_v36, 4  ;;  %v3588_v36 = vpack.c.bf16 %v2726_v34, %v2725_v32 }
0x11e6   :  { %v2478_v45 = vpop.f32.mrb[36].mxu1 }
0x11e7   :  { %v2483_v47 = vrot.slane %v2478_v45, 4  ;;  %v3502_v48 = vpop.f32.mrb[37].mxu1 }
0x11e8   :  { %v3129_v48 = vld [vmem:[#allocation4] ss:$0 sm:$0xff] }
0x11e9   :  { %v2485_v49 = vadd.f32 %v2483_v47, %v4404_v10 }
0x11eb   :  { %3771 = vtanh.f32 %v2485_v49  ;;  %v3124_v53 = vmul.f32 -1.442695, %v2485_v49 }
0x11ed   :  { %3773 = vpow2.f32 %v3124_v53 }
0x11f5   :  { %v3772_v52 = vpop.eup %3771 }
0x11f6   :  { %2498 = vrot.lane.b32.xlu0 %v3772_v52, %s3803_s20 }
0x11f7   :  { %v3774_v55 = vpop.eup %3773 }
0x11f8   :  { %v2489_v42 = vadd.f32 1.0, %v3774_v55 }
0x11fa   :  { %3775 = vrcp.f32 %v2489_v42 }
0x1204   :  { %v3776_v56 = vpop.eup %3775 }
0x1205   :  { %v2496_v59 = vmul.f32 %v3776_v56, %v2494_v46 }
0x1268   :  { %v2499_v57 = vpop.permute.xlu0 %2498 }
0x1269   :  { %v2501_v58 = vmul.f32 %v3776_v56, %v2499_v57 }
0x126b   :  { %2503 = vrot.lane.b32.xlu1 %v2501_v58, %s3804_s8 }
0x12dd   :  { %v2504_v60 = vpop.permute.xlu1 %2503 }
0x12de   :  { %v2506_v63 = vadd.f32 %v2504_v60, %v2496_v59 }
0x12e0   :  { %3777 = vtanh.f32 %v2506_v63  ;;  %v2598_v18 = vrot.slane %v2506_v63, 4 }
0x12ea   :  { %v3778_v10 = vpop.eup %3777 }
0x12eb   :  { %2509 = vrot.lane.b32.xlu0 %v3778_v10, %s3803_s20 }
0x135d   :  { %v2510_v0 = vpop.permute.xlu0 %2509 }
0x135e   :  { %v2512_v3 = vmul.f32 %v3776_v56, %v2510_v0 }
0x1360   :  { %v2514_v4 = vrot.slane %v2512_v3, 4 }
0x1362   :  { %2515 = vrot.lane.b32.xlu1 %v2514_v4, %s3804_s8 }
0x13d4   :  { %v2516_v5 = vpop.permute.xlu1 %2515 }
0x13d5   :  { %3512 = vmatmul.mubr.msk.f32.vlgmr.msra.gmra.mrb[30].mxu0 %vm1888_vm7, %v2516_v5 }
0x13d6   :  { %3533 = vmatprep.mubr.msk.f32.mxu0 %vm3802_vm6, %v3800_v35 }
0x14a8   :  { %v2585_v9 = vpop.f32.mrb[30].mxu0 }
0x14a9   :  { %v2589_v6 = vadd.f32 %v2585_v9, %v4406_v11  ;;  %v3513_v1 = vpop.f32.mrb[31].mxu0 }
0x14ab   :  { %3779 = vtanh.f32 %v2589_v6  ;;  %v3126_v14 = vmul.f32 -1.442695, %v2589_v6 }
0x14ad   :  { %3781 = vpow2.f32 %v3126_v14 }
0x14b5   :  { %v3780_v13 = vpop.eup %3779 }
0x14b6   :  { %2602 = vrot.lane.b32.xlu0 %v3780_v13, %s3803_s20 }
0x14b7   :  { %v3782_v17 = vpop.eup %3781 }
0x14b8   :  { %v2593_v8 = vadd.f32 1.0, %v3782_v17 }
0x14ba   :  { %3783 = vrcp.f32 %v2593_v8 }
0x14c4   :  { %v3784_v54 = vpop.eup %3783 }
0x14c5   :  { %v2600_v35 = vmul.f32 %v3784_v54, %v2598_v18 }
0x1528   :  { %v2603_v61 = vpop.permute.xlu0 %2602 }
0x1529   :  { %v2605_v2 = vmul.f32 %v3784_v54, %v2603_v61 }
0x152b   :  { %2607 = vrot.lane.b32.xlu1 %v2605_v2, %s3804_s8 }
0x159d   :  { %v2608_v19 = vpop.permute.xlu1 %2607 }
0x159e   :  { %v2610_v51 = vadd.f32 %v2608_v19, %v2600_v35 }
0x15a0   :  { %3785 = vtanh.f32 %v2610_v51  ;;  %v2704_v26 = vrot.slane %v2610_v51, 4 }
0x15aa   :  { %v3786_v15 = vpop.eup %3785 }
0x15ab   :  { %2613 = vrot.lane.b32.xlu0 %v3786_v15, %s3803_s20 }
0x161d   :  { %v2614_v37 = vpop.permute.xlu0 %2613 }
0x161e   :  { %v2616_v62 = vmul.f32 %v3784_v54, %v2614_v37 }
0x1620   :  { %2618 = vrot.lane.b32.xlu1 %v2616_v62, %s3804_s8 }
0x1692   :  { %v2619_v7 = vpop.permute.xlu1 %2618 }
0x1693   :  { %3523 = vmatmul.mubr.msk.f32.vlgmr.msra.gmra.mrb[38].mxu1 %vm1888_vm7, %v2619_v7 }
0x1766   :  { %v2688_v20 = vpop.f32.mrb[38].mxu1 }
0x1767   :  { %v2693_v16 = vrot.slane %v2688_v20, 4  ;;  %v3524_v21 = vpop.f32.mrb[39].mxu1 }
0x1769   :  { %v2695_v22 = vadd.f32 %v2693_v16, %v4406_v11  ;;  %v2723_v11 = vld [vmem:[%s4516_s10] sm:$0xff] }
0x176a   :  { %v3585_v33 = vpack.c.bf16 %v2724_v31, %v2723_v11 }
0x176b   :  { %3787 = vtanh.f32 %v2695_v22  ;;  %v3128_v24 = vmul.f32 -1.442695, %v2695_v22 }
0x176c   :  { %3586 = vmatpush3.bf16.msra.mxu0 %v3585_v33 }
0x176d   :  { %3789 = vpow2.f32 %v3128_v24  ;;  %3587 = vmatprep.subr.bf16.mxu0 %v3801_v39 }
0x1770   :  { %3589 = vmatpush3.bf16.msra.mxu0 %v3588_v36 }
0x1775   :  { %v3788_v23 = vpop.eup %3787 }
0x1776   :  { %2708 = vrot.lane.b32.xlu0 %v3788_v23, %s3803_s20 }
0x1777   :  { %v3790_v25 = vpop.eup %3789 }
0x1778   :  { %v2699_v12 = vadd.f32 1.0, %v3790_v25 }
0x177a   :  { %3791 = vrcp.f32 %v2699_v12 }
0x1784   :  { %v3792_v29 = vpop.eup %3791 }
0x1785   :  { %v2706_v27 = vmul.f32 %v3792_v29, %v2704_v26 }
0x17e8   :  { %v2709_v44 = vpop.permute.xlu0 %2708 }
0x17e9   :  { %v2711_v50 = vmul.f32 %v3792_v29, %v2709_v44 }
0x17eb   :  { %2713 = vrot.lane.b32.xlu1 %v2711_v50, %s3804_s8 }
0x185d   :  { %v2714_v28 = vpop.permute.xlu1 %2713 }
0x185e   :  { %v2716_v30 = vadd.f32 %v2714_v28, %v2706_v27 }
0x1860   :  { %3793 = vtanh.f32 %v2716_v30 }
0x186a   :  { %v3794_v38 = vpop.eup %3793 }
0x186b   :  { %2719 = vrot.lane.b32.xlu0 %v3794_v38, %s3803_s20 }
0x18dd   :  { %v2720_v41 = vpop.permute.xlu0 %2719 }
0x18de   :  { %v2722_v43 = vmul.f32 %v3792_v29, %v2720_v41 }
0x18e0   :  { %v2735_v45 = vrot.slane %v2722_v43, 4 }
0x18e2   :  { %2736 = vrot.lane.b32.xlu1 %v2735_v45, %s3804_s8 }
0x1954   :  { %v2737_v47 = vpop.permute.xlu1 %2736 }
0x1955   :  { %3534 = vmatmul.mubr.msk.f32.vlgmr.msra.gmra.mrb[32].mxu0 %vm1888_vm7, %v2737_v47 }
0x1a28   :  { %v2806_v49 = vpop.f32.mrb[32].mxu0 }
0x1a29   :  { %v2807_v39 = vadd.f32 %v3129_v48, %v2806_v49  ;;  %v3535_v52 = vpop.f32.mrb[33].mxu0 }
0x1a2b   :  { %v3131_v53 = vmul.f32 -1.442695, %v2807_v39 }
0x1a2d   :  { %3795 = vpow2.f32 %v3131_v53 }
0x1a37   :  { %v3796_v55 = vpop.eup %3795 }
0x1a38   :  { %v2813_v42 = vadd.f32 1.0, %v3796_v55 }
0x1a3a   :  { %3797 = vrcp.f32 %v2813_v42 }
0x1a44   :  { %v3798_v56 = vpop.eup %3797 }
0x1a45   :  { %2817 = vst.msk [vmem:[%s4518_s12] sm:$0x3] %vm2816_vm8, %v3798_v56 }

</bundles_post_ra>
